<compile_context>
chip_gen: v7x
topology: tpu7x:2x2x1
jax: 0.10.0
libtpu: 0.0.40
codegen_flags: <defaults>
</compile_context>

<pallas_src>
import functools

import jax
import jax.numpy as jnp
from jax.experimental import pallas as pl
from jax.experimental.pallas import tpu as pltpu


# ---------------------------------------------------------------------------
# Pallas kernel: lift-stub + VotingModule (vote_factor = 1) + L2 feature norm
# ---------------------------------------------------------------------------
def _voting_kernel(xyz_ref, liftw_ref,
                   w1_ref, s1_ref, t1_ref,
                   w2_ref, s2_ref, t2_ref,
                   w3_ref, b3_ref,
                   seed_feat_ref, vote_feat_ref, vote_xyz_ref,
                   *, n_valid_rows):
    tm = vote_feat_ref.shape[0]
    C = vote_feat_ref.shape[1]

    xyz = xyz_ref[...]                                   # (tm, 3) f32

    # Backbone-stub lift as 3 broadcast-FMAs on the VPU (K=3 is far too thin for the MXU);
    # tanh goes to the otherwise-idle EUP slot.
    lw = liftw_ref[...]                                  # (3, C) f32
    pre = (xyz[:, 0:1] * lw[0:1, :]
           + xyz[:, 1:2] * lw[1:2, :]
           + xyz[:, 2:3] * lw[2:3, :])                   # (tm, C) f32
    seed_feat = jnp.tanh(pre)
    seed_feat_ref[...] = seed_feat.astype(seed_feat_ref.dtype)

    # conv1 (1x1) + BN1 (folded scale/shift) + ReLU — bf16 MXU operands, f32 epilogue.
    h1 = jnp.dot(seed_feat.astype(jnp.bfloat16), w1_ref[...],
                 preferred_element_type=jnp.float32)
    h1 = jnp.maximum(h1 * s1_ref[...] + t1_ref[...], 0.0)

    # conv2 (1x1) + BN2 + ReLU
    h2 = jnp.dot(h1.astype(jnp.bfloat16), w2_ref[...],
                 preferred_element_type=jnp.float32)
    h2 = jnp.maximum(h2 * s2_ref[...] + t2_ref[...], 0.0)

    # conv3 (1x1), fused lane-dense (C + 128) output:
    #   lanes [0:C]     -> feature residual
    #   lanes [C:C+3]   -> xyz offset
    #   lanes [C+3:]    -> zero padding (keeps the matmul N a multiple of 128)
    y3 = jnp.dot(h2.astype(jnp.bfloat16), w3_ref[...],
                 preferred_element_type=jnp.float32) + b3_ref[...]   # (tm, C+128)

    # vote_xyz = seed_xyz + offset (vote_factor = 1); narrow (tm, 3) store.
    vote_xyz_ref[...] = xyz + y3[:, C:C + 3]

    # vote_features = seed_features + residual, then L2-normalize over channels (f32).
    vote_feat = seed_feat + y3[:, :C]
    sq = jnp.sum(vote_feat * vote_feat, axis=-1, keepdims=True)
    inv_norm = jax.lax.rsqrt(sq)                         # matches PyTorch (no eps)
    if n_valid_rows % tm != 0:
        # Guard row-padded tail against rsqrt(0) -> inf/NaN; real rows untouched.
        row = pl.program_id(0) * tm + jax.lax.broadcasted_iota(jnp.int32, (tm, 1), 0)
        inv_norm = jnp.where(row < n_valid_rows, inv_norm, 0.0)
    vote_feat_ref[...] = vote_feat * inv_norm


def _choose_row_tile(rows, tm_max):
    # Keep >= 2 grid steps whenever possible so the "parallel" axis can shard across both
    # v7x TensorCores; round the tile up to the 8-sublane granule.
    half = (rows + 1) // 2
    tm = min(tm_max, half)
    tm = max(8, ((tm + 7) // 8) * 8)
    return tm


def voting_module_pallas(seed_xyz, lift_w, params, tm=1024):
    """seed_xyz: (B, N, 3) f32; lift_w: (3, C) f32 (backbone-stub lift weight).

    Returns (seed_features[bf16], vote_xyz[f32], vote_features[f32]), channels-last.
    """
    B, N, _ = seed_xyz.shape
    (w1, s1, t1, w2, s2, t2, w3, b3) = params
    C = w1.shape[0]
    CP = w3.shape[1]                   # C + 128 (lane-padded fused conv3 output width)

    rows = B * N
    tm = _choose_row_tile(rows, tm)
    num_tiles = (rows + tm - 1) // tm
    rows_p = num_tiles * tm

    xyz2 = seed_xyz.reshape(rows, 3)
    if rows_p != rows:
        xyz2 = jnp.pad(xyz2, ((0, rows_p - rows), (0, 0)))

    full = lambda shape: pl.BlockSpec(shape, lambda i: (0, 0))

    out_shapes = (
        jax.ShapeDtypeStruct((rows_p, C), jnp.bfloat16),   # seed_features (lift output)
        jax.ShapeDtypeStruct((rows_p, C), jnp.float32),    # vote_features (L2-normalized)
        jax.ShapeDtypeStruct((rows_p, 3), jnp.float32),    # vote_xyz
    )

    grid_spec = pltpu.PrefetchScalarGridSpec(
        num_scalar_prefetch=0,
        grid=(num_tiles,),
        in_specs=[
            pl.BlockSpec((tm, 3), lambda i: (i, 0)),        # seed_xyz (narrow, unpadded)
            full((3, C)),                                   # lift_w (f32, used on VPU)
            full((C, C)),                                   # w1 (bf16)
            full((1, C)),                                   # bn1 scale
            full((1, C)),                                   # bn1 shift (conv bias folded)
            full((C, C)),                                   # w2 (bf16)
            full((1, C)),                                   # bn2 scale
            full((1, C)),                                   # bn2 shift
            full((C, CP)),                                  # w3 fused (bf16)
            full((1, CP)),                                  # b3 fused (f32)
        ],
        out_specs=[
            pl.BlockSpec((tm, C), lambda i: (i, 0)),
            pl.BlockSpec((tm, C), lambda i: (i, 0)),
            pl.BlockSpec((tm, 3), lambda i: (i, 0)),
        ],
    )

    # Advisory cost estimate so XLA schedules surrounding ops around this small call.
    flops = 2 * rows_p * (3 * C + C * C + C * C + C * CP)
    bytes_accessed = (
        rows_p * 3 * 4 + lift_w.size * 4
        + (w1.size + w2.size + w3.size) * 2
        + (s1.size + t1.size + s2.size + t2.size + b3.size) * 4
        + rows_p * (C * 2 + C * 4 + 3 * 4)
    )
    cost = pl.CostEstimate(flops=flops,
                           transcendentals=rows_p * (C + 1),
                           bytes_accessed=bytes_accessed)

    seed_feat, vote_feat, vote_xyz = pl.pallas_call(
        functools.partial(_voting_kernel, n_valid_rows=rows),
        out_shape=out_shapes,
        grid_spec=grid_spec,
        compiler_params=pltpu.CompilerParams(
            dimension_semantics=("parallel",)),
        cost_estimate=cost,
    )(xyz2, lift_w, w1, s1, t1, w2, s2, t2, w3, b3)

    seed_feat = seed_feat[:rows].reshape(B, N, C)
    vote_feat = vote_feat[:rows].reshape(B, N, C)
    vote_xyz = vote_xyz[:rows].reshape(B, N, 3)
    return seed_feat, vote_xyz, vote_feat


# ---------------------------------------------------------------------------
# Deterministic parameter construction (VotingModule(vote_factor=1, 256))
# ---------------------------------------------------------------------------
def make_voting_params(key, C=256):
    ks = jax.random.split(key, 8)
    scale = 0.02
    # Conv1d(k=1) weights expressed as (C_in, C_out) matmul weights.
    w1 = scale * jax.random.normal(ks[0], (C, C), jnp.float32)
    b1 = scale * jax.random.normal(ks[1], (1, C), jnp.float32)
    w2 = scale * jax.random.normal(ks[2], (C, C), jnp.float32)
    b2 = scale * jax.random.normal(ks[3], (1, C), jnp.float32)
    # conv3: (3 + C) outputs -> xyz-offset part and feature-residual part.
    w3x = scale * jax.random.normal(ks[4], (C, 3), jnp.float32)
    b3x = scale * jax.random.normal(ks[5], (1, 3), jnp.float32)
    w3f = scale * jax.random.normal(ks[6], (C, C), jnp.float32)
    b3f = scale * jax.random.normal(ks[7], (1, C), jnp.float32)

    # BatchNorm1d (eval mode) folded with conv bias into per-channel affine:
    #   y = s * (x @ W) + t,  s = gamma/sqrt(var+eps),  t = (bias - mean)*s + beta.
    eps = 1e-5
    gamma1 = jnp.ones((1, C), jnp.float32); beta1 = jnp.zeros((1, C), jnp.float32)
    mean1 = jnp.zeros((1, C), jnp.float32); var1 = jnp.ones((1, C), jnp.float32)
    s1 = gamma1 / jnp.sqrt(var1 + eps)
    t1 = (b1 - mean1) * s1 + beta1

    gamma2 = jnp.ones((1, C), jnp.float32); beta2 = jnp.zeros((1, C), jnp.float32)
    mean2 = jnp.zeros((1, C), jnp.float32); var2 = jnp.ones((1, C), jnp.float32)
    s2 = gamma2 / jnp.sqrt(var2 + eps)
    t2 = (b2 - mean2) * s2 + beta2

    # Fuse conv3 into one lane-dense (C, C+128) weight / (1, C+128) bias:
    #   lanes [0:C] -> feature residual, [C:C+3] -> xyz offset, [C+3:] -> zero padding.
    CP = C + 128
    w3 = jnp.zeros((C, CP), jnp.float32)
    w3 = w3.at[:, :C].set(w3f).at[:, C:C + 3].set(w3x)
    b3 = jnp.zeros((1, CP), jnp.float32)
    b3 = b3.at[:, :C].set(b3f).at[:, C:C + 3].set(b3x)

    # MXU operands stored as bf16; affine/bias terms (f32 epilogue) stay f32.
    return (w1.astype(jnp.bfloat16), s1, t1,
            w2.astype(jnp.bfloat16), s2, t2,
            w3.astype(jnp.bfloat16), b3)


# ---------------------------------------------------------------------------
# Pure-JAX f32 reference (same math, f32 activations) for tolerance checking.
# bf16 MXU operands in the kernel give ~1e-2-level relative deviations by design.
# ---------------------------------------------------------------------------
def reference_forward(seed_xyz, lift_w, params):
    w1, s1, t1, w2, s2, t2, w3, b3 = params
    B, N, _ = seed_xyz.shape
    C = w1.shape[0]
    x = seed_xyz.reshape(B * N, 3)
    seed = jnp.tanh(x @ lift_w)
    h1 = jnp.maximum((seed @ w1.astype(jnp.float32)) * s1 + t1, 0.0)
    h2 = jnp.maximum((h1 @ w2.astype(jnp.float32)) * s2 + t2, 0.0)
    y3 = h2 @ w3.astype(jnp.float32) + b3
    vote_xyz = x + y3[:, C:C + 3]
    vf = seed + y3[:, :C]
    vf = vf / jnp.linalg.norm(vf, axis=-1, keepdims=True)
    return (seed.reshape(B, N, C), vote_xyz.reshape(B, N, 3), vf.reshape(B, N, C))


# ---------------------------------------------------------------------------
# VqaNet forward (Pallas-backed hot path; backbone is a deterministic stub)
# ---------------------------------------------------------------------------
def vqanet_forward(point_clouds, voting_params, lift_w, num_seed=64):
    """point_clouds: (B, N_pts, 3 + input_feature_dim), input_feature_dim = 0."""
    # TODO(synk): Pointnet2Backbone (fp2_xyz / fp2_features / fp2_inds) replaced by a
    # deterministic subsample + pointwise lift stub (lift fused into the Pallas kernel).
    B = point_clouds.shape[0]
    seed_xyz = point_clouds[:, :num_seed, :3]                      # (B, N, 3)  ~ fp2_xyz

    # --- Pallas hot path: lift stub + VotingModule + L2 feature normalization -----
    seed_features, vote_xyz, vote_features = voting_module_pallas(
        seed_xyz, lift_w, voting_params)

    data_dict = {
        "seed_inds": jnp.arange(num_seed, dtype=jnp.int32)[None, :].repeat(B, axis=0),
        "seed_xyz": seed_xyz,
        "seed_features": seed_features,       # (B, N, 256) bf16, channels-last ~ fp2_features
        "vote_xyz": vote_xyz,                 # (B, N, 3) f32
        "vote_features": vote_features,       # (B, N, 256) f32, L2-normalized over channels
    }

    # TODO(synk): ProposalModule, LangModule.encode, RelationModule, CrossmodalModule,
    # LangModule.decode — source not provided; omitted.
    return data_dict


if __name__ == "__main__":
    key = jax.random.PRNGKey(0)
    k_pts, k_params, k_lift = jax.random.split(key, 3)

    B, N_PTS, NUM_SEED, C = 2, 256, 64, 256
    point_clouds = jax.random.normal(k_pts, (B, N_PTS, 3), jnp.float32)

    voting_params = make_voting_params(k_params, C=C)
    lift_w = 0.1 * jax.random.normal(k_lift, (3, C), jnp.float32)

    fwd = jax.jit(functools.partial(vqanet_forward, num_seed=NUM_SEED))
    out = fwd(point_clouds, voting_params, lift_w)
    jax.block_until_ready(out)

    assert out["seed_features"].shape == (B, NUM_SEED, C)
    assert out["vote_xyz"].shape == (B, NUM_SEED, 3)
    assert out["vote_features"].shape == (B, NUM_SEED, C)

    # features must be unit-norm along the channel dim (normalization is f32 in-kernel).
    norms = jnp.linalg.norm(out["vote_features"], axis=-1)
    assert bool(jnp.all(jnp.abs(norms - 1.0) < 1e-4))

    # Tolerance check vs pure-JAX f32 reference (documents the bf16-MXU deviation).
    ref_seed, ref_xyz, ref_vf = reference_forward(
        point_clouds[:, :NUM_SEED, :3], lift_w, voting_params)
    assert bool(jnp.allclose(out["seed_features"].astype(jnp.float32), ref_seed,
                             atol=2e-2, rtol=2e-2))
    assert bool(jnp.allclose(out["vote_xyz"], ref_xyz, atol=2e-2, rtol=2e-2))
    assert bool(jnp.allclose(out["vote_features"], ref_vf, atol=2e-2, rtol=2e-2))

    print("KERNEL_OK")
</pallas_src>

<mosaic_0001>
module attributes {stable_mosaic.version = 11 : i64} {
  func.func @_voting_kernel(%arg0: i32, %arg1: memref<64x3xf32, #tpu.memory_space<vmem>>, %arg2: memref<3x256xf32, #tpu.memory_space<vmem>>, %arg3: memref<256x256xbf16, #tpu.memory_space<vmem>>, %arg4: memref<1x256xf32, #tpu.memory_space<vmem>>, %arg5: memref<1x256xf32, #tpu.memory_space<vmem>>, %arg6: memref<256x256xbf16, #tpu.memory_space<vmem>>, %arg7: memref<1x256xf32, #tpu.memory_space<vmem>>, %arg8: memref<1x256xf32, #tpu.memory_space<vmem>>, %arg9: memref<256x384xbf16, #tpu.memory_space<vmem>>, %arg10: memref<1x384xf32, #tpu.memory_space<vmem>>, %arg11: memref<64x256xbf16, #tpu.memory_space<vmem>>, %arg12: memref<64x256xf32, #tpu.memory_space<vmem>>, %arg13: memref<64x3xf32, #tpu.memory_space<vmem>>) attributes {dimension_semantics = [#tpu.dimension_semantics<parallel>], iteration_bounds = array<i64: 2>, scalar_prefetch = 0 : i64, scratch_operands = 0 : i64, tpu.core_type = #tpu.core_type<tc>, window_params = [{transform_indices = @transform_0, window_bounds = array<i64: 64, 3>}, {pipeline_mode = #tpu.pipeline_mode<synchronous>, transform_indices = @transform_1, window_bounds = array<i64: 3, 256>}, {pipeline_mode = #tpu.pipeline_mode<synchronous>, transform_indices = @transform_2, window_bounds = array<i64: 256, 256>}, {pipeline_mode = #tpu.pipeline_mode<synchronous>, transform_indices = @transform_3, window_bounds = array<i64: 1, 256>}, {pipeline_mode = #tpu.pipeline_mode<synchronous>, transform_indices = @transform_4, window_bounds = array<i64: 1, 256>}, {pipeline_mode = #tpu.pipeline_mode<synchronous>, transform_indices = @transform_5, window_bounds = array<i64: 256, 256>}, {pipeline_mode = #tpu.pipeline_mode<synchronous>, transform_indices = @transform_6, window_bounds = array<i64: 1, 256>}, {pipeline_mode = #tpu.pipeline_mode<synchronous>, transform_indices = @transform_7, window_bounds = array<i64: 1, 256>}, {pipeline_mode = #tpu.pipeline_mode<synchronous>, transform_indices = @transform_8, window_bounds = array<i64: 256, 384>}, {pipeline_mode = #tpu.pipeline_mode<synchronous>, transform_indices = @transform_9, window_bounds = array<i64: 1, 384>}, {transform_indices = @transform_10, window_bounds = array<i64: 64, 256>}, {transform_indices = @transform_11, window_bounds = array<i64: 64, 256>}, {transform_indices = @transform_12, window_bounds = array<i64: 64, 3>}]} {
    %c0 = arith.constant 0 : index
    %c0_0 = arith.constant 0 : index
    %0 = vector.load %arg1[%c0, %c0_0] : memref<64x3xf32, #tpu.memory_space<vmem>>, vector<64x3xf32>
    %c0_1 = arith.constant 0 : index
    %c0_2 = arith.constant 0 : index
    %1 = vector.load %arg2[%c0_1, %c0_2] : memref<3x256xf32, #tpu.memory_space<vmem>>, vector<3x256xf32>
    %2 = vector.extract_strided_slice %0 {offsets = [0, 0], sizes = [64, 1], strides = [1, 1]} : vector<64x3xf32> to vector<64x1xf32>
    %3 = vector.extract_strided_slice %1 {offsets = [0, 0], sizes = [1, 256], strides = [1, 1]} : vector<3x256xf32> to vector<1x256xf32>
    %4 = vector.broadcast %2 : vector<64x1xf32> to vector<64x256xf32>
    %5 = vector.broadcast %3 : vector<1x256xf32> to vector<64x256xf32>
    %6 = arith.mulf %4, %5 : vector<64x256xf32>
    %7 = vector.extract_strided_slice %0 {offsets = [0, 1], sizes = [64, 1], strides = [1, 1]} : vector<64x3xf32> to vector<64x1xf32>
    %8 = vector.extract_strided_slice %1 {offsets = [1, 0], sizes = [1, 256], strides = [1, 1]} : vector<3x256xf32> to vector<1x256xf32>
    %9 = vector.broadcast %7 : vector<64x1xf32> to vector<64x256xf32>
    %10 = vector.broadcast %8 : vector<1x256xf32> to vector<64x256xf32>
    %11 = arith.mulf %9, %10 : vector<64x256xf32>
    %12 = arith.addf %6, %11 : vector<64x256xf32>
    %13 = vector.extract_strided_slice %0 {offsets = [0, 2], sizes = [64, 1], strides = [1, 1]} : vector<64x3xf32> to vector<64x1xf32>
    %14 = vector.extract_strided_slice %1 {offsets = [2, 0], sizes = [1, 256], strides = [1, 1]} : vector<3x256xf32> to vector<1x256xf32>
    %15 = vector.broadcast %13 : vector<64x1xf32> to vector<64x256xf32>
    %16 = vector.broadcast %14 : vector<1x256xf32> to vector<64x256xf32>
    %17 = arith.mulf %15, %16 : vector<64x256xf32>
    %18 = arith.addf %12, %17 : vector<64x256xf32>
    %19 = math.tanh %18 : vector<64x256xf32>
    %20 = arith.truncf %19 : vector<64x256xf32> to vector<64x256xbf16>
    %c0_3 = arith.constant 0 : index
    %c0_4 = arith.constant 0 : index
    %21 = vector.load %arg11[%c0_3, %c0_4] : memref<64x256xbf16, #tpu.memory_space<vmem>>, vector<64x256xbf16>
    tpu.vector_store %arg11[%c0_3, %c0_4], %20 {strides = array<i32>} : memref<64x256xbf16, #tpu.memory_space<vmem>>, vector<64x256xbf16>,
    %22 = arith.truncf %19 : vector<64x256xf32> to vector<64x256xbf16>
    %c0_5 = arith.constant 0 : index
    %c0_6 = arith.constant 0 : index
    %23 = vector.load %arg3[%c0_5, %c0_6] : memref<256x256xbf16, #tpu.memory_space<vmem>>, vector<256x256xbf16>
    %cst = arith.constant dense<0.000000e+00> : vector<64x256xf32>
    %24 = tpu.matmul %22, %23, %cst {dimension_numbers = #tpu.dot_dimension_numbers<[1], [0], [0], [1], [0, 0, 1, 1], [], []>} : vector<64x256xbf16>, vector<256x256xbf16>, vector<64x256xf32> -> vector<64x256xf32>
    %c0_7 = arith.constant 0 : index
    %c0_8 = arith.constant 0 : index
    %25 = vector.load %arg4[%c0_7, %c0_8] : memref<1x256xf32, #tpu.memory_space<vmem>>, vector<1x256xf32>
    %26 = vector.broadcast %25 : vector<1x256xf32> to vector<64x256xf32>
    %27 = arith.mulf %24, %26 : vector<64x256xf32>
    %c0_9 = arith.constant 0 : index
    %c0_10 = arith.constant 0 : index
    %28 = vector.load %arg5[%c0_9, %c0_10] : memref<1x256xf32, #tpu.memory_space<vmem>>, vector<1x256xf32>
    %29 = vector.broadcast %28 : vector<1x256xf32> to vector<64x256xf32>
    %30 = arith.addf %27, %29 : vector<64x256xf32>
    %cst_11 = arith.constant 0.000000e+00 : f32
    %31 = vector.broadcast %cst_11 : f32 to vector<64x256xf32>
    %32 = arith.maximumf %30, %31 : vector<64x256xf32>
    %33 = arith.truncf %32 : vector<64x256xf32> to vector<64x256xbf16>
    %c0_12 = arith.constant 0 : index
    %c0_13 = arith.constant 0 : index
    %34 = vector.load %arg6[%c0_12, %c0_13] : memref<256x256xbf16, #tpu.memory_space<vmem>>, vector<256x256xbf16>
    %cst_14 = arith.constant dense<0.000000e+00> : vector<64x256xf32>
    %35 = tpu.matmul %33, %34, %cst_14 {dimension_numbers = #tpu.dot_dimension_numbers<[1], [0], [0], [1], [0, 0, 1, 1], [], []>} : vector<64x256xbf16>, vector<256x256xbf16>, vector<64x256xf32> -> vector<64x256xf32>
    %c0_15 = arith.constant 0 : index
    %c0_16 = arith.constant 0 : index
    %36 = vector.load %arg7[%c0_15, %c0_16] : memref<1x256xf32, #tpu.memory_space<vmem>>, vector<1x256xf32>
    %37 = vector.broadcast %36 : vector<1x256xf32> to vector<64x256xf32>
    %38 = arith.mulf %35, %37 : vector<64x256xf32>
    %c0_17 = arith.constant 0 : index
    %c0_18 = arith.constant 0 : index
    %39 = vector.load %arg8[%c0_17, %c0_18] : memref<1x256xf32, #tpu.memory_space<vmem>>, vector<1x256xf32>
    %40 = vector.broadcast %39 : vector<1x256xf32> to vector<64x256xf32>
    %41 = arith.addf %38, %40 : vector<64x256xf32>
    %cst_19 = arith.constant 0.000000e+00 : f32
    %42 = vector.broadcast %cst_19 : f32 to vector<64x256xf32>
    %43 = arith.maximumf %41, %42 : vector<64x256xf32>
    %44 = arith.truncf %43 : vector<64x256xf32> to vector<64x256xbf16>
    %c0_20 = arith.constant 0 : index
    %c0_21 = arith.constant 0 : index
    %45 = vector.load %arg9[%c0_20, %c0_21] : memref<256x384xbf16, #tpu.memory_space<vmem>>, vector<256x384xbf16>
    %cst_22 = arith.constant dense<0.000000e+00> : vector<64x384xf32>
    %46 = tpu.matmul %44, %45, %cst_22 {dimension_numbers = #tpu.dot_dimension_numbers<[1], [0], [0], [1], [0, 0, 1, 1], [], []>} : vector<64x256xbf16>, vector<256x384xbf16>, vector<64x384xf32> -> vector<64x384xf32>
    %c0_23 = arith.constant 0 : index
    %c0_24 = arith.constant 0 : index
    %47 = vector.load %arg10[%c0_23, %c0_24] : memref<1x384xf32, #tpu.memory_space<vmem>>, vector<1x384xf32>
    %48 = vector.broadcast %47 : vector<1x384xf32> to vector<64x384xf32>
    %49 = arith.addf %46, %48 : vector<64x384xf32>
    %50 = vector.extract_strided_slice %49 {offsets = [0, 256], sizes = [64, 3], strides = [1, 1]} : vector<64x384xf32> to vector<64x3xf32>
    %51 = arith.addf %0, %50 : vector<64x3xf32>
    %c0_25 = arith.constant 0 : index
    %c0_26 = arith.constant 0 : index
    %52 = vector.load %arg13[%c0_25, %c0_26] : memref<64x3xf32, #tpu.memory_space<vmem>>, vector<64x3xf32>
    tpu.vector_store %arg13[%c0_25, %c0_26], %51 {strides = array<i32>} : memref<64x3xf32, #tpu.memory_space<vmem>>, vector<64x3xf32>,
    %53 = vector.extract_strided_slice %49 {offsets = [0, 0], sizes = [64, 256], strides = [1, 1]} : vector<64x384xf32> to vector<64x256xf32>
    %54 = arith.addf %19, %53 : vector<64x256xf32>
    %55 = arith.mulf %54, %54 : vector<64x256xf32>
    %cst_27 = arith.constant dense<0.000000e+00> : vector<64xf32>
    %56 = vector.multi_reduction <add>, %55, %cst_27 [1] : vector<64x256xf32> to vector<64xf32>
    %57 = vector.shape_cast %56 : vector<64xf32> to vector<64x1xf32>
    %58 = math.rsqrt %57 : vector<64x1xf32>
    %59 = vector.broadcast %58 : vector<64x1xf32> to vector<64x256xf32>
    %60 = arith.mulf %54, %59 : vector<64x256xf32>
    %c0_28 = arith.constant 0 : index
    %c0_29 = arith.constant 0 : index
    %61 = vector.load %arg12[%c0_28, %c0_29] : memref<64x256xf32, #tpu.memory_space<vmem>>, vector<64x256xf32>
    tpu.vector_store %arg12[%c0_28, %c0_29], %60 {strides = array<i32>} : memref<64x256xf32, #tpu.memory_space<vmem>>, vector<64x256xf32>,
    return
  }
  func.func @transform_0(%arg0: i32) -> (i32, i32) {
    %c0_i32 = arith.constant 0 : i32
    %c0_i32_0 = arith.constant 0 : i32
    return %arg0, %c0_i32 : i32, i32
  }
  func.func @transform_1(%arg0: i32) -> (i32, i32) {
    %c0_i32 = arith.constant 0 : i32
    %c0_i32_0 = arith.constant 0 : i32
    %c0_i32_1 = arith.constant 0 : i32
    return %c0_i32, %c0_i32_0 : i32, i32
  }
  func.func @transform_2(%arg0: i32) -> (i32, i32) {
    %c0_i32 = arith.constant 0 : i32
    %c0_i32_0 = arith.constant 0 : i32
    %c0_i32_1 = arith.constant 0 : i32
    return %c0_i32, %c0_i32_0 : i32, i32
  }
  func.func @transform_3(%arg0: i32) -> (i32, i32) {
    %c0_i32 = arith.constant 0 : i32
    %c0_i32_0 = arith.constant 0 : i32
    %c0_i32_1 = arith.constant 0 : i32
    return %c0_i32, %c0_i32_0 : i32, i32
  }
  func.func @transform_4(%arg0: i32) -> (i32, i32) {
    %c0_i32 = arith.constant 0 : i32
    %c0_i32_0 = arith.constant 0 : i32
    %c0_i32_1 = arith.constant 0 : i32
    return %c0_i32, %c0_i32_0 : i32, i32
  }
  func.func @transform_5(%arg0: i32) -> (i32, i32) {
    %c0_i32 = arith.constant 0 : i32
    %c0_i32_0 = arith.constant 0 : i32
    %c0_i32_1 = arith.constant 0 : i32
    return %c0_i32, %c0_i32_0 : i32, i32
  }
  func.func @transform_6(%arg0: i32) -> (i32, i32) {
    %c0_i32 = arith.constant 0 : i32
    %c0_i32_0 = arith.constant 0 : i32
    %c0_i32_1 = arith.constant 0 : i32
    return %c0_i32, %c0_i32_0 : i32, i32
  }
  func.func @transform_7(%arg0: i32) -> (i32, i32) {
    %c0_i32 = arith.constant 0 : i32
    %c0_i32_0 = arith.constant 0 : i32
    %c0_i32_1 = arith.constant 0 : i32
    return %c0_i32, %c0_i32_0 : i32, i32
  }
  func.func @transform_8(%arg0: i32) -> (i32, i32) {
    %c0_i32 = arith.constant 0 : i32
    %c0_i32_0 = arith.constant 0 : i32
    %c0_i32_1 = arith.constant 0 : i32
    return %c0_i32, %c0_i32_0 : i32, i32
  }
  func.func @transform_9(%arg0: i32) -> (i32, i32) {
    %c0_i32 = arith.constant 0 : i32
    %c0_i32_0 = arith.constant 0 : i32
    %c0_i32_1 = arith.constant 0 : i32
    return %c0_i32, %c0_i32_0 : i32, i32
  }
  func.func @transform_10(%arg0: i32) -> (i32, i32) {
    %c0_i32 = arith.constant 0 : i32
    %c0_i32_0 = arith.constant 0 : i32
    return %arg0, %c0_i32 : i32, i32
  }
  func.func @transform_11(%arg0: i32) -> (i32, i32) {
    %c0_i32 = arith.constant 0 : i32
    %c0_i32_0 = arith.constant 0 : i32
    return %arg0, %c0_i32 : i32, i32
  }
  func.func @transform_12(%arg0: i32) -> (i32, i32) {
    %c0_i32 = arith.constant 0 : i32
    %c0_i32_0 = arith.constant 0 : i32
    return %arg0, %c0_i32 : i32, i32
  }
}

</mosaic_0001>

<bundles_post_ra>
// kernel: vqanet_forward.1
= control target key start
LH: loop header
LB: loop body
LE: loop exit
PB: predicated region body
PF: predicated region fallthrough
CT: control target
= control target key end

     0   :  { %s3766_s0 = inlined_call_operand.vmem [shape: f32[128,3], index: 0, kind: input, shape index: {}]   ;;  %s3767_s1 = inlined_call_operand.vmem [shape: f32[3,256], index: 1, kind: input, shape index: {}]   ;;  %s3768_s2 = inlined_call_operand.hbm [shape: bf16[256,256], index: 2, kind: input, shape index: {}]   ;;  %s3769_s3 = inlined_call_operand.vmem [shape: f32[1,256], index: 3, kind: input, shape index: {}]   ;;  %s3770_s4 = inlined_call_operand.vmem [shape: f32[1,256], index: 4, kind: input, shape index: {}]   ;;  %s3771_s5 = inlined_call_operand.hbm [shape: bf16[256,256], index: 5, kind: input, shape index: {}]   ;;  %s3772_s6 = inlined_call_operand.vmem [shape: f32[1,256], index: 6, kind: input, shape index: {}]   ;;  %s3773_s7 = inlined_call_operand.vmem [shape: f32[1,256], index: 7, kind: input, shape index: {}]   ;;  %s3774_s8 = inlined_call_operand.hbm [shape: bf16[256,384], index: 8, kind: input, shape index: {}]   ;;  %s3775_s9 = inlined_call_operand.vmem [shape: f32[1,384], index: 9, kind: input, shape index: {}]   ;;  %s3776_s10 = inlined_call_operand.hbm [shape: bf16[128,256], index: 10, kind: output, shape index: {0}]   ;;  %s3777_s11 = inlined_call_operand.hbm [shape: f32[128,256], index: 11, kind: output, shape index: {1}]   ;;  %s3778_s12 = inlined_call_operand.vmem [shape: f32[128,3], index: 12, kind: output, shape index: {2}]  }
   0x1   :  { %3790 = sst [smem:[#allocation21_spill]] %s3776_s10 }
   0x2   :  { %3791 = sst [smem:[#allocation22_spill]] %s3777_s11 }
   0x3   :  { %18 = vsyncpa [#allocation3], 0 }
   0x4   :  { %19 = vsyncpa [#allocation6], 0 }
   0x5   :  { %20 = vsyncpa [#allocation4], 0 }
   0x6   :  { %22 = vsyncpa [#allocation4 + $0x1], 0 }
   0x7   :  { %23 = vsyncpa [#allocation10], 0 }
   0x8   :  { %25 = vsyncpa [#allocation10 + $0x1], 0  ;;  %s3063_s21 = smov 0   ;;  %s3065_s22 = smov 0  }
   0x9   :  { %s3067_s23 = smov 0   ;;  %s3069_s24 = smov 0  }
   0xa LB: > { %3792 = sst [smem:[#allocation15_spill]] %s2968_s21  ;;  %s3084_s25 = sadd.s32 4294967295, %s2980_s24   ;;  %s2980_s24 = sphi %s3069_s24, %s3815_s24   ;;  %s2976_s23 = sphi %s3067_s23, %s3817_s23   ;;  %s2972_s22 = sphi %s3065_s22, %s3819_s22   ;;  %s2968_s21 = sphi %s3063_s21, %s3818_s21  }
   0xb   : > { %3793 = sst [smem:[#allocation16_spill]] %s2976_s23  ;;  %s2279_s26 = sadd.s32 4294967294, %s2980_s24  }
   0xc   : > { %3794 = sst [smem:[#allocation17_spill]] %s2980_s24  ;;  %s3088_s27 = sadd.s32 1, %s2980_s24  }
   0xd   : > { %3795 = sst [smem:[#allocation18_spill]] %s3088_s27  ;;  %s253_s28 = sadd.s32 1, %s2976_s23 }
   0xe   : > { %s250_s29 = ssub.s32 %s2980_s24, %s3088_s27  ;;  %p263_p0 = scmp.ne.s32.totalorder %s2976_s23, %s2972_s22 }
   0xf   : > { %p251_p1 = scmp.eq.s32.totalorder %s250_s29, 0  ;;  %p264_p2 = scmp.eq.s32.totalorder %s3084_s25, 1 }
  0x10   : > { %p269_p3 = scmp.ne.s32.totalorder %s2972_s22, %s2968_s21  ;;  %p270_p4 = scmp.eq.s32.totalorder %s2279_s26, 1 }
  0x11   : > { %s3099_s30 = scalar_select %p251_p1, %s2976_s23, %s253_s28  }
  0x12   : > { %p3101_p5 = por %p264_p2, %p263_p0  ;;  %p3105_p6 = por %p270_p4, %p269_p3 }
  0x13   : > { %3796 = sst [smem:[#allocation19_spill]] %s3099_s30  ;;  %p2280_p7 = scmp.ge.s32.totalorder %s2980_s24, 1 }
  0x14   : > { %s3797_s13 = scalar_select %p3101_p5, 1, 0 }
  0x15   : > { %s3798_s14 = scalar_select %p3105_p6, 1, 0 }
  0x16   : > { %p329_p8 = scmp.lt.s32.totalorder %s2980_s24, 3  ;;  %p3783_p9 = scmp.eq.s32.totalorder %s3084_s25, 0 }
  0x17   : > { %3799 = sst [smem:[#allocation20_spill]] %s3798_s14  ;;  %s2982_s16 = smov [#allocation5]  }
  0x18   : > { %p3112_p10 = pnand %p2280_p7, %p329_p8  ;;  %s363_s17 = sshll.u32 %s2982_s16, 4  ;;  %s3118_s17 = int_to_ptr.vmem [resolvable:$true] %s363_s17 }
  0x19   : > { %s2983_s19 = smov [#allocation2]   ;;  %s2984_s26 = smov [#allocation7]  }
  0x1a   : > { %s3800_s15 = scalar_select %p3112_p10, 1, 0 }
  0x1b   : > { %p2493_p11 = pneg %p3112_p10  ;;  %s344_s20 = sshll.u32 %s2983_s19, 4  ;;  %s3126_s20 = int_to_ptr.vmem [resolvable:$true] %s344_s20 }
  0x1c   : > { %s3128_s28 = sshll.u32 %s2984_s26, 4  ;;  %s2794_s23 = scalar_lea.hbm %s3771_s5, 4096  ;;  %s383_s28 = int_to_ptr.vmem [resolvable:$true] %s3128_s28 }
  0x1d   : > { %p3122_p12 = pnand %p3783_p9, %p2493_p11  ;;  %p2795_p13 = scmp.ne.s32.totalorder %s3771_s5, %s2794_s23 }
  0x1e   : > { %p2801_p3 = scmp.lt.u32.totalorder %s2794_s23, %s3771_s5 }
  0x1f   : > { %p3138_p0 = pneg %p3122_p12 }
  0x21   : > { %p2797_p1 = pnand %p3138_p0, %p2795_p13 }
  0x23   : > { %p2798_p2 = pneg %p2797_p1 }
  0x25   : > { %p2803_p4 = pnand %p2801_p3, %p2798_p2 }
  0x27   : > { %2806 = shalt.err (!%p2803_p4)
}
  0x28   : > { %s2807_s27 = scalar_lea.vmem %s3118_s17, 4096  ;;  %p2815_p9 = scmp.lt.s32.totalorder %s3118_s17, %s3118_s17 }
  0x29   : > { %p2808_p7 = scmp.ne.s32.totalorder %s3118_s17, %s2807_s27  ;;  %p2816_p6 = scmp.lt.s32.totalorder %s2807_s27, %s2807_s27 }
  0x2b   : > { %p2810_p8 = pnand %p2808_p7, %p3138_p0  ;;  %p2817_p13 = por %p2816_p6, %p2815_p9 }
  0x2d   : > { %p2811_p11 = pneg %p2810_p8 }
  0x2f   : > { %p2818_p1 = pnand %p2817_p13, %p2811_p11 }
  0x31   : > { %2821 = shalt.err (!%p2818_p1)
}
  0x32   : > { %s2985_s30 = smov 128   ;;  %s2986_s23 = smov 8  }
  0x33   : > { %2499 = dma.hbm_to_vmem [thread:$0]  (!%p3122_p12), %s3771_s5, 4096, %s3118_s17, [#allocation6], %s2985_s30, %s2985_s30, %s2986_s23  }
  0x34   : > { %s2822_s21 = scalar_lea.hbm %s3768_s2, 4096 }
  0x35   : > { %p2823_p6 = scmp.ne.s32.totalorder %s3768_s2, %s2822_s21  ;;  %p2829_p3 = scmp.lt.u32.totalorder %s2822_s21, %s3768_s2 }
  0x37   : > { %p2825_p9 = pnand %p2823_p6, %p3138_p0 }
  0x39   : > { %p2826_p2 = pneg %p2825_p9 }
  0x3b   : > { %p2831_p4 = pnand %p2829_p3, %p2826_p2 }
  0x3d   : > { %2834 = shalt.err (!%p2831_p4)
}
  0x3e   : > { %s2835_s17 = scalar_lea.vmem %s3126_s20, 4096  ;;  %p2843_p13 = scmp.lt.s32.totalorder %s3126_s20, %s3126_s20 }
  0x3f   : > { %p2836_p7 = scmp.ne.s32.totalorder %s3126_s20, %s2835_s17  ;;  %p2844_p1 = scmp.lt.s32.totalorder %s2835_s17, %s2835_s17 }
  0x41   : > { %p2838_p8 = pnand %p2836_p7, %p3138_p0  ;;  %p2845_p6 = por %p2844_p1, %p2843_p13 }
  0x43   : > { %p2839_p11 = pneg %p2838_p8 }
  0x45   : > { %p2846_p9 = pnand %p2845_p6, %p2839_p11 }
  0x47   : > { %2849 = shalt.err (!%p2846_p9)
}
  0x48   : > { %2496 = dma.hbm_to_vmem [thread:$0]  (!%p3122_p12), %s3768_s2, 4096, %s3126_s20, [#allocation3], %s2985_s30, %s2985_s30, %s2986_s23  }
  0x49   : > { %s2850_s29 = scalar_lea.hbm %s3774_s8, 6144 }
  0x4a   : > { %p2851_p2 = scmp.ne.s32.totalorder %s3774_s8, %s2850_s29  ;;  %p2857_p7 = scmp.lt.u32.totalorder %s2850_s29, %s3774_s8 }
  0x4c   : > { %p2853_p3 = pnand %p2851_p2, %p3138_p0 }
  0x4e   : > { %p2854_p4 = pneg %p2853_p3 }
  0x50   : > { %p2859_p8 = pnand %p2857_p7, %p2854_p4 }
  0x52   : > { %2862 = shalt.err (!%p2859_p8)
}
  0x53   : > { %s2863_s17 = scalar_lea.vmem %s383_s28, 6144  ;;  %p2871_p6 = scmp.lt.s32.totalorder %s383_s28, %s383_s28 }
  0x54   : > { %p2864_p11 = scmp.ne.s32.totalorder %s383_s28, %s2863_s17  ;;  %p2872_p9 = scmp.lt.s32.totalorder %s2863_s17, %s2863_s17 }
  0x56   : > { %p2866_p13 = pnand %p2864_p11, %p3138_p0  ;;  %p2873_p5 = por %p2872_p9, %p2871_p6 }
  0x58   : > { %p2867_p1 = pneg %p2866_p13 }
  0x5a   : > { %p2874_p10 = pnand %p2873_p5, %p2867_p1 }
  0x5c   : > { %2877 = shalt.err (!%p2874_p10)
}
  0x5d   : > { %s2987_s20 = smov 192   ;;  %s2988_s30 = smov 12  }
  0x5e   : > { %2502 = dma.hbm_to_vmem [thread:$0]  (!%p3122_p12), %s3774_s8, 6144, %s383_s28, [#allocation6], %s2987_s20, %s2987_s20, %s2988_s30  }
  0x5f   : > { %p3803_p2 = scmp.ne.s32.totalorder %s3800_s15, 0 }
  0x60   : > { %p3804_p3 = scmp.eq.s32.totalorder (!%p3803_p2), %s3084_s25, 0 }
  0x61   : > { %410 = sbr.rel (%p3803_p2) target bundleno = 1170 (0x492), region = 60 }
  0x68   : > { %2951 = dma.done.wait (%p3804_p3), [#allocation3], 4096   ;;  %p3805_p0 = pmov %p3804_p3 }
  0x6a   : > { %2953 = vsyncadd (%p3805_p0), [#allocation3], 4294963200  ;;  %p3806_p5 = pmov %p3805_p0 }
  0x6b   : > { %p3807_p10 = pmov %p3805_p0 }
  0x6c   : > { %2955 = dma.done.wait (%p3806_p5), [#allocation6], 10240  }
  0x6d   : > { %2957 = vsyncadd (%p3807_p10), [#allocation6], 4294957056  ;;  %s2291_s14 = sshll.u32 %s3084_s25, 3  ;;  %v2989_v0 = vmov 1   ;;  %v2990_v1 = vmov 0   ;;  %v2991_v10 = vmov 2   ;;  %v535_v60 = vlaneseq }
  0x6e   : > { %2564 = vset.pattern.permute.xlu1 %v2989_v0  ;;  %2563 = vset.pattern.permute.xlu0 %v2990_v1  ;;  %p471_p12 = scmp.lt.s32.totalorder %s2291_s14, 15  ;;  %v2578_v4 = vld [vmem:[#allocation2 + $0x4] ss:$8 sps:$4 sm:$0xff]   ;;  %v2580_v5 = vld [vmem:[#allocation2] ss:$8 sps:$4 sm:$0xff]   ;;  %s3288_s29 = sand.u32 1, %s2972_s22  }
  0x6f   : > { %v2581_v6 = vld [vmem:[#allocation2 + $0x14] ss:$8 sps:$4 sm:$0xff]   ;;  %997 = vmatprep.subr.bf16.mxu0 %v2578_v4  ;;  %v2583_v8 = vld [vmem:[#allocation2 + $0x10] ss:$8 sps:$4 sm:$0xff]   ;;  %v2584_v9 = vld [vmem:[#allocation2 + $0x24] ss:$8 sps:$4 sm:$0xff]  }
  0x70   : > { %s3821_s14 = smov (!%p471_p12, %s2291_s14), 15  ;;  %998 = vmatpush1.bf16.msra.mxu0 %v2580_v5  ;;  %v2586_v12 = vld [vmem:[#allocation2 + $0x20] ss:$8 sps:$4 sm:$0xff]   ;;  %v2587_v13 = vld [vmem:[#allocation2 + $0x34] ss:$8 sps:$4 sm:$0xff]   ;;  %v536_v63 = vshrl.u32 %v535_v60, 7 }
  0x71   : > { %s2292_s15 = sshll.u32 %s3821_s14, 3  ;;  %999 = vmatprep.subr.bf16.mxu0 %v2581_v6  ;;  %v2589_v14 = vld [vmem:[#allocation2 + $0x30] ss:$8 sps:$4 sm:$0xff]   ;;  %v2590_v15 = vld [vmem:[#allocation2 + $0x44] ss:$8 sps:$4 sm:$0xff]   ;;  %s2289_s16 = sshll.u32 %s3288_s29, 6 }
  0x72   : > { %s3222_s11 = scalar_lea.vmem %s3766_s0, %s2292_s15  ;;  %v2592_v16 = vld [vmem:[#allocation2 + $0x40] ss:$8 sps:$4 sm:$0xff]   ;;  %v2593_v17 = vld [vmem:[#allocation2 + $0x54] ss:$8 sps:$4 sm:$0xff]   ;;  %v2595_v20 = vld [vmem:[#allocation2 + $0x50] ss:$8 sps:$4 sm:$0xff]   ;;  %s3529_s26 = scalar_lea.vmem %s3778_s12, %s2292_s15 }
  0x73   : > { %v485_v2 = vld [vmem:[%s3222_s11] sm:$0xff]  ;;  %v486_v3 = vld [vmem:[%s3222_s11 + $0x8] sm:$0xff]  ;;  %v488_v7 = vld [vmem:[%s3222_s11 + $0x18] sm:$0xff]  ;;  %v3247_v4 = vsub.s32 0, %v536_v63  ;;  %v541_v5 = vsub.s32 4, %v536_v63  ;;  %s3309_s19 = scalar_lea.vmem [#allocation8], %s2289_s16 }
  0x74   : > { %570 = vperm.xlu1 %2564, %v485_v2   ;;  %496 = vperm.xlu0 %2563, %v485_v2   ;;  %v487_v11 = vld [vmem:[%s3222_s11 + $0x10] sm:$0xff]  ;;  %v489_v18 = vld [vmem:[%s3222_s11 + $0x20] sm:$0xff]  ;;  %v490_v19 = vld [vmem:[%s3222_s11 + $0x28] sm:$0xff]  ;;  %vm1978_vm0 = vcmask 23552   ;;  %s2434_s14 = sshll.u32 %s3084_s25, 10  ;;  %s3808_s17 = sld [smem:[#allocation21_spill]] }
  0x75   : > { %1000 = vmatpush1.bf16.msra.mxu0 %v2583_v8  ;;  %v2596_v21 = vld [vmem:[#allocation2 + $0x64] ss:$8 sps:$4 sm:$0xff]   ;;  %v492_v22 = vld [vmem:[%s3222_s11 + $0x38] sm:$0xff]  ;;  %v2598_v23 = vld [vmem:[#allocation2 + $0x60] ss:$8 sps:$4 sm:$0xff]   ;;  %v689_v8 = vsub.s32 6, %v536_v63 }
  0x76   : > { %1001 = vmatprep.subr.bf16.mxu0 %v2584_v9  ;;  %v2599_v24 = vld [vmem:[#allocation2 + $0x74] ss:$8 sps:$4 sm:$0xff]   ;;  %v2601_v25 = vld [vmem:[#allocation2 + $0x70] ss:$8 sps:$4 sm:$0xff]   ;;  %v2602_v26 = vld [vmem:[#allocation2 + $0x84] ss:$8 sps:$4 sm:$0xff]  }
  0x77   : > { %v491_v27 = vld [vmem:[%s3222_s11 + $0x30] sm:$0xff]  ;;  %v2604_v28 = vld [vmem:[#allocation2 + $0x80] ss:$8 sps:$4 sm:$0xff]   ;;  %v2608_v31 = vld [vmem:[#allocation2 + $0xa4] ss:$8 sps:$4 sm:$0xff]   ;;  %s2108_s30 = sshll.u32 %s3309_s19, 4  ;;  %s3655_s30 = int_to_ptr.vmem [resolvable:$true] %s2108_s30 }
  0x78   : > { %574 = vperm.xlu1 %2564, %v486_v3   ;;  %501 = vperm.xlu0 %2563, %v486_v3   ;;  %v2605_v29 = vld [vmem:[#allocation2 + $0x94] ss:$8 sps:$4 sm:$0xff]   ;;  %v2607_v30 = vld [vmem:[#allocation2 + $0x90] ss:$8 sps:$4 sm:$0xff]   ;;  %v2610_v32 = vld [vmem:[#allocation2 + $0xa0] ss:$8 sps:$4 sm:$0xff]  }
  0x79   : > { %1002 = vmatpush1.bf16.msra.mxu0 %v2586_v12  ;;  %v2611_v33 = vld [vmem:[#allocation2 + $0xb4] ss:$8 sps:$4 sm:$0xff]   ;;  %v2613_v34 = vld [vmem:[#allocation2 + $0xb0] ss:$8 sps:$4 sm:$0xff]   ;;  %v2614_v35 = vld [vmem:[#allocation2 + $0xc4] ss:$8 sps:$4 sm:$0xff]  }
  0x7a   : > { %1003 = vmatprep.subr.bf16.mxu0 %v2587_v13  ;;  %v2616_v36 = vld [vmem:[#allocation2 + $0xc0] ss:$8 sps:$4 sm:$0xff]   ;;  %v2617_v37 = vld [vmem:[#allocation2 + $0xd4] ss:$8 sps:$4 sm:$0xff]   ;;  %v2619_v38 = vld [vmem:[#allocation2 + $0xd0] ss:$8 sps:$4 sm:$0xff]   ;;  %s3652_s20 = scalar_lea.hbm %s3808_s17, %s2434_s14 }
  0x7b   : > { %v2620_v39 = vld [vmem:[#allocation2 + $0xe4] ss:$8 sps:$4 sm:$0xff]   ;;  %v2622_v40 = vld [vmem:[#allocation2 + $0xe0] ss:$8 sps:$4 sm:$0xff]   ;;  %v2623_v41 = vld [vmem:[#allocation2 + $0xf4] ss:$8 sps:$4 sm:$0xff]  }
  0x7c   : > { %2565 = vset.pattern.permute.xlu1 %v2991_v10  ;;  %511 = vperm.xlu0 %2563, %v488_v7   ;;  %v2625_v42 = vld [vmem:[#allocation2 + $0xf0] ss:$8 sps:$4 sm:$0xff]   ;;  %v2626_v43 = vld [vmem:[#allocation5 + $0x4] ss:$8 sps:$4 sm:$0xff]   ;;  %v2628_v44 = vld [vmem:[#allocation5] ss:$8 sps:$4 sm:$0xff]  }
  0x7d   : > { %656 = vperm.xlu1 %2565, %v486_v3   ;;  %1004 = vmatpush1.bf16.msra.mxu0 %v2589_v14  ;;  %v2629_v45 = vld [vmem:[#allocation5 + $0x14] ss:$8 sps:$4 sm:$0xff]   ;;  %v2631_v46 = vld [vmem:[#allocation5 + $0x10] ss:$8 sps:$4 sm:$0xff]   ;;  %v2632_v47 = vld [vmem:[#allocation5 + $0x24] ss:$8 sps:$4 sm:$0xff]  }
  0x7e   : > { %1005 = vmatprep.subr.bf16.mxu0 %v2590_v15  ;;  %1342 = vmatprep.subr.bf16.mxu1 %v2626_v43  ;;  %v2634_v48 = vld [vmem:[#allocation5 + $0x20] ss:$8 sps:$4 sm:$0xff]   ;;  %v2635_v49 = vld [vmem:[#allocation5 + $0x34] ss:$8 sps:$4 sm:$0xff]   ;;  %v2637_v50 = vld [vmem:[#allocation5 + $0x30] ss:$8 sps:$4 sm:$0xff]  }
  0x7f   : > { %1343 = vmatpush1.bf16.msra.mxu1 %v2628_v44  ;;  %v2638_v51 = vld [vmem:[#allocation5 + $0x44] ss:$8 sps:$4 sm:$0xff]   ;;  %v2640_v52 = vld [vmem:[#allocation5 + $0x40] ss:$8 sps:$4 sm:$0xff]   ;;  %v2641_v53 = vld [vmem:[#allocation5 + $0x54] ss:$8 sps:$4 sm:$0xff]  }
  0x80   : > { %2567 = vset.pattern.permute.xlu0 %v2991_v10  ;;  %1344 = vmatprep.subr.bf16.mxu1 %v2629_v45  ;;  %v2643_v54 = vld [vmem:[#allocation5 + $0x50] ss:$8 sps:$4 sm:$0xff]   ;;  %v2644_v55 = vld [vmem:[#allocation5 + $0x64] ss:$8 sps:$4 sm:$0xff]   ;;  %v2646_v56 = vld [vmem:[#allocation5 + $0x60] ss:$8 sps:$4 sm:$0xff]  }
  0x81   : > { %2566 = vset.pattern.permute.xlu1 %v2990_v1  ;;  %652 = vperm.xlu0 %2567, %v485_v2   ;;  %v2647_v57 = vld [vmem:[#allocation5 + $0x74] ss:$8 sps:$4 sm:$0xff]   ;;  %v2649_v58 = vld [vmem:[#allocation5 + $0x70] ss:$8 sps:$4 sm:$0xff]   ;;  %v2650_v59 = vld [vmem:[#allocation5 + $0x84] ss:$8 sps:$4 sm:$0xff]  }
  0x82   : > { %506 = vperm.xlu1 %2566, %v487_v11   ;;  %1006 = vmatpush1.bf16.msra.mxu0 %v2592_v16  ;;  %v2652_v61 = vld [vmem:[#allocation5 + $0x80] ss:$8 sps:$4 sm:$0xff]   ;;  %v2653_v62 = vld [vmem:[#allocation5 + $0x94] ss:$8 sps:$4 sm:$0xff]   ;;  %v3245_v2 = vsub.s32 1, %v536_v63  ;;  %v607_v3 = vsub.s32 5, %v536_v63 }
  0x83   : > { %1007 = vmatprep.subr.bf16.mxu0 %v2593_v17  ;;  %1345 = vmatpush1.bf16.msra.mxu1 %v2631_v46  ;;  %v493_v6 = vld [vmem:[%s3767_s1] sm:$0x77]  ;;  %s2878_s23 = scalar_lea.vmem %s3655_s30, 1024  ;;  %p3809_p7 = scmp.ne.s32.totalorder %s3797_s13, 0 }
  0x84   : > { %1346 = vmatprep.subr.bf16.mxu1 %v2632_v47  ;;  %v2658_v9 = vld [vmem:[#allocation5 + $0xa0] ss:$8 sps:$4 sm:$0xff]   ;;  %v608_v12 = vrot.slane %v493_v6, %v607_v3  ;;  %v538_v14 = vrot.slane %v493_v6, %v3247_v4  ;;  %v542_v15 = vrot.slane %v493_v6, %v541_v5  ;;  %p2879_p4 = scmp.ne.s32.totalorder %s3655_s30, %s2878_s23  ;;  %s2992_s10 = smov [#allocation8]  }
  0x85   : > { %660 = vperm.xlu0 %2567, %v487_v11   ;;  %s2882_s18 = sshll.u32 %s2992_s10, 4  ;;  %s2883_s18 = int_to_ptr.vmem [resolvable:$false] %s2882_s18 }
  0x86   : > { %2568 = vset.pattern.permute.xlu1 %v2989_v0  ;;  %1008 = vmatpush1.bf16.msra.mxu0 %v2595_v20  ;;  %v2662_v20 = vld [vmem:[#allocation5 + $0xc4] ss:$8 sps:$4 sm:$0xff]   ;;  %p2880_p8 = pnand %p2879_p4, %p3809_p7  ;;  %s2884_s28 = scalar_lea.vmem %s2883_s18, 2048 }
  0x87   : > { %578 = vperm.xlu1 %2568, %v487_v11   ;;  %1009 = vmatprep.subr.bf16.mxu0 %v2596_v21  ;;  %v604_v11 = vrot.slane %v493_v6, %v3245_v2  ;;  %p2885_p13 = scmp.lt.s32.totalorder %s3655_s30, %s2883_s18  ;;  %p2886_p1 = scmp.lt.s32.totalorder %s2884_s28, %s2878_s23 }
  0x88   : > { %1347 = vmatpush1.bf16.msra.mxu1 %v2634_v48  ;;  %p2881_p11 = pneg %p2880_p8 }
  0x89   : > { %668 = vperm.xlu0 %2567, %v489_v18   ;;  %1348 = vmatprep.subr.bf16.mxu1 %v2635_v49  ;;  %v3258_v21 = vrot.slane %v604_v11, %v3245_v2  ;;  %p2887_p6 = por %p2886_p1, %p2885_p13 }
  0x8a   : > { %1010 = vmatpush1.bf16.msra.mxu0 %v2598_v23  ;;  %v3264_v23 = vrot.slane %v538_v14, %v3247_v4 }
  0x8b   : > { %582 = vperm.xlu1 %2568, %v488_v7   ;;  %1011 = vmatprep.subr.bf16.mxu0 %v2599_v24  ;;  %v3267_v24 = vrot.slane %v542_v15, %v3247_v4  ;;  %p2888_p9 = pnand %p2887_p6, %p2881_p11 }
  0x8c   : > { %1349 = vmatpush1.bf16.msra.mxu1 %v2637_v50 }
  0x8d   : > { %2572 = vset.pattern.permute.xlu0 %v2990_v1  ;;  %1350 = vmatprep.subr.bf16.mxu1 %v2638_v51 }
  0x8e   : > { %521 = vperm.xlu0 %2572, %v490_v19   ;;  %1012 = vmatpush1.bf16.msra.mxu0 %v2601_v25 }
  0x8f   : > { %2569 = vset.pattern.permute.xlu1 %v2991_v10  ;;  %1013 = vmatprep.subr.bf16.mxu0 %v2602_v26 }
  0x90   : > { %664 = vperm.xlu1 %2569, %v488_v7   ;;  %1351 = vmatpush1.bf16.msra.mxu1 %v2640_v52  ;;  %v3252_v7 = vsub.s32 2, %v536_v63 }
  0x91   : > { %1352 = vmatprep.subr.bf16.mxu1 %v2641_v53 }
  0x92   : > { %531 = vperm.xlu0 %2572, %v492_v22   ;;  %1014 = vmatpush1.bf16.msra.mxu0 %v2604_v28  ;;  %v686_v17 = vrot.slane %v493_v6, %v3252_v7 }
  0x93   : > { %1015 = vmatprep.subr.bf16.mxu0 %v2605_v29  ;;  %v2664_v29 = vld [vmem:[#allocation5 + $0xc0] ss:$8 sps:$4 sm:$0xff]  }
  0x94   : > { %2570 = vset.pattern.permute.xlu1 %v2990_v1  ;;  %1353 = vmatpush1.bf16.msra.mxu1 %v2643_v54 }
  0x95   : > { %516 = vperm.xlu1 %2570, %v489_v18   ;;  %1354 = vmatprep.subr.bf16.mxu1 %v2644_v55 }
  0x96   : > { %2576 = vset.pattern.permute.xlu0 %v2991_v10  ;;  %1016 = vmatpush1.bf16.msra.mxu0 %v2607_v30 }
  0x97   : > { %676 = vperm.xlu0 %2576, %v491_v27   ;;  %1017 = vmatprep.subr.bf16.mxu0 %v2608_v31 }
  0x98   : > { %1355 = vmatpush1.bf16.msra.mxu1 %v2646_v56 }
  0x99   : > { %2571 = vset.pattern.permute.xlu1 %v2989_v0  ;;  %1356 = vmatprep.subr.bf16.mxu1 %v2647_v57 }
  0x9a   : > { %586 = vperm.xlu1 %2571, %v489_v18   ;;  %1018 = vmatpush1.bf16.msra.mxu0 %v2610_v32  ;;  %v690_v18 = vrot.slane %v493_v6, %v689_v8 }
  0x9b   : > { %1019 = vmatprep.subr.bf16.mxu0 %v2611_v33 }
  0x9c   : > { %1357 = vmatpush1.bf16.msra.mxu1 %v2649_v58  ;;  %v3273_v28 = vrot.slane %v690_v18, %v3252_v7 }
  0x9d   : > { %1358 = vmatprep.subr.bf16.mxu1 %v2650_v59 }
  0x9e   : > { %590 = vperm.xlu1 %2571, %v490_v19   ;;  %1020 = vmatpush1.bf16.msra.mxu0 %v2613_v34 }
  0x9f   : > { %1021 = vmatprep.subr.bf16.mxu0 %v2614_v35 }
  0xa0   : > { %1359 = vmatpush1.bf16.msra.mxu1 %v2652_v61 }
  0xa1   : > { %1360 = vmatprep.subr.bf16.mxu1 %v2653_v62 }
  0xa2   : > { %2573 = vset.pattern.permute.xlu1 %v2991_v10  ;;  %1022 = vmatpush1.bf16.msra.mxu0 %v2616_v36 }
  0xa3   : > { %672 = vperm.xlu1 %2573, %v490_v19   ;;  %1023 = vmatprep.subr.bf16.mxu0 %v2617_v37  ;;  %v2661_v19 = vld [vmem:[#allocation5 + $0xb0] ss:$8 sps:$4 sm:$0xff]  }
  0xa6   : > { %1024 = vmatpush1.bf16.msra.mxu0 %v2619_v38 }
  0xa7   : > { %2574 = vset.pattern.permute.xlu1 %v2990_v1  ;;  %1025 = vmatprep.subr.bf16.mxu0 %v2620_v39  ;;  %v2656_v1 = vld [vmem:[#allocation5 + $0xa4] ss:$8 sps:$4 sm:$0xff]  }
  0xa8   : > { %526 = vperm.xlu1 %2574, %v491_v27  }
  0xaa   : > { %1026 = vmatpush1.bf16.msra.mxu0 %v2622_v40 }
  0xab   : > { %1027 = vmatprep.subr.bf16.mxu0 %v2623_v41 }
  0xac   : > { %2575 = vset.pattern.permute.xlu1 %v2989_v0  ;;  %v2655_v0 = vld [vmem:[#allocation5 + $0x90] ss:$8 sps:$4 sm:$0xff]  }
  0xad   : > { %594 = vperm.xlu1 %2575, %v491_v27   ;;  %1361 = vmatpush1.bf16.msra.mxu1 %v2655_v0  ;;  %v3270_v27 = vrot.slane %v686_v17, %v3252_v7 }
  0xae   : > { %1028 = vmatpush1.bf16.msra.mxu0 %v2625_v42  ;;  %1362 = vmatprep.subr.bf16.mxu1 %v2656_v1 }
  0xb1   : > { %598 = vperm.xlu1 %2575, %v492_v22   ;;  %1363 = vmatpush1.bf16.msra.mxu1 %v2658_v9 }
  0xb5   : > { %2577 = vset.pattern.permute.xlu1 %v2991_v10  ;;  %v2659_v10 = vld [vmem:[#allocation5 + $0xb4] ss:$8 sps:$4 sm:$0xff]  }
  0xb6   : > { %680 = vperm.xlu1 %2577, %v492_v22   ;;  %1364 = vmatprep.subr.bf16.mxu1 %v2659_v10  ;;  %v3261_v22 = vrot.slane %v608_v12, %v3245_v2 }
  0xb7   : > { %1365 = vmatpush1.bf16.msra.mxu1 %v2661_v19 }
  0xb8   : > { %1366 = vmatprep.subr.bf16.mxu1 %v2662_v20 }
  0xbb   : > { %1367 = vmatpush1.bf16.msra.mxu1 %v2664_v29 }
  0xf3   : > { %v571_v13 = vpop.permute.xlu1 %570  ;;  %v497_v16 = vpop.permute.xlu0 %496 }
  0xf4   : > { %v619_v35 = vmul.f32 %v3258_v21, %v571_v13  ;;  %v620_v36 = vmul.f32 %v3261_v22, %v571_v13  ;;  %v553_v37 = vmul.f32 %v3264_v23, %v497_v16  ;;  %v554_v38 = vmul.f32 %v3267_v24, %v497_v16 }
  0xf6   : > { %v635_v46 = vadd.f32 %v619_v35, %v553_v37  ;;  %v636_v48 = vadd.f32 %v620_v36, %v554_v38 }
  0xf7   : > { %v575_v25 = vpop.permute.xlu1 %574  ;;  %v502_v26 = vpop.permute.xlu0 %501 }
  0xf8   : > { %v621_v30 = vmul.f32 %v3258_v21, %v575_v25  ;;  %v622_v31 = vmul.f32 %v3261_v22, %v575_v25  ;;  %v555_v32 = vmul.f32 %v3264_v23, %v502_v26  ;;  %v556_v33 = vmul.f32 %v3267_v24, %v502_v26 }
  0xfa   : > { %v637_v40 = vadd.f32 %v621_v30, %v555_v32  ;;  %v638_v41 = vadd.f32 %v622_v31, %v556_v33 }
  0xfb   : > { %v512_v34 = vpop.permute.xlu0 %511 }
  0xfc   : > { %v657_v39 = vpop.permute.xlu1 %656  ;;  %v559_v3 = vmul.f32 %v3264_v23, %v512_v34  ;;  %v560_v10 = vmul.f32 %v3267_v24, %v512_v34 }
  0xfd   : > { %v703_v42 = vmul.f32 %v3270_v27, %v657_v39  ;;  %v704_v43 = vmul.f32 %v3273_v28, %v657_v39 }
  0xff   : > { %v719_v44 = vadd.f32 %v703_v42, %v637_v40  ;;  %v720_v45 = vadd.f32 %v704_v43, %v638_v41 }
 0x100   : > { %v653_v47 = vpop.permute.xlu0 %652 }
 0x101   : > { %2738 = vtanh.f32 %v719_v44  ;;  %v701_v49 = vmul.f32 %v3270_v27, %v653_v47  ;;  %v702_v50 = vmul.f32 %v3273_v28, %v653_v47  ;;  %v507_v51 = vpop.permute.xlu1 %506 }
 0x102   : > { %2740 = vtanh.f32 %v720_v45  ;;  %v557_v55 = vmul.f32 %v3264_v23, %v507_v51  ;;  %v558_v56 = vmul.f32 %v3267_v24, %v507_v51 }
 0x103   : > { %v717_v52 = vadd.f32 %v701_v49, %v635_v46  ;;  %v718_v53 = vadd.f32 %v702_v50, %v636_v48 }
 0x104   : > { %v661_v54 = vpop.permute.xlu0 %660 }
 0x105   : > { %2742 = vtanh.f32 %v717_v52  ;;  %v705_v60 = vmul.f32 %v3270_v27, %v661_v54  ;;  %v706_v61 = vmul.f32 %v3273_v28, %v661_v54 }
 0x106   : > { %2744 = vtanh.f32 %v718_v53  ;;  %v579_v57 = vpop.permute.xlu1 %578 }
 0x107   : > { %v623_v58 = vmul.f32 %v3258_v21, %v579_v57  ;;  %v624_v59 = vmul.f32 %v3261_v22, %v579_v57 }
 0x108   : > { %v669_v32 = vpop.permute.xlu0 %668 }
 0x109   : > { %v639_v62 = vadd.f32 %v623_v58, %v557_v55  ;;  %v640_v63 = vadd.f32 %v624_v59, %v558_v56  ;;  %v709_v37 = vmul.f32 %v3270_v27, %v669_v32  ;;  %v710_v38 = vmul.f32 %v3273_v28, %v669_v32 }
 0x10a   : > { %v583_v0 = vpop.permute.xlu1 %582 }
 0x10b   : > { %v3297_v1 = vpop.eup %2738  ;;  %v721_v5 = vadd.f32 %v705_v60, %v639_v62  ;;  %v722_v6 = vadd.f32 %v706_v61, %v640_v63  ;;  %v625_v8 = vmul.f32 %v3258_v21, %v583_v0  ;;  %v626_v11 = vmul.f32 %v3261_v22, %v583_v0 }
 0x10c   : > { %v3301_v9 = vpop.eup %2740 }
 0x10d   : > { %v2426_v12 = vpack.c.bf16 %v3301_v9, %v3297_v1  ;;  %2746 = vtanh.f32 %v721_v5  ;;  %v641_v14 = vadd.f32 %v625_v8, %v559_v3  ;;  %v642_v17 = vadd.f32 %v626_v11, %v560_v10  ;;  %v522_v45 = vpop.permute.xlu0 %521 }
 0x10e   : > { %2748 = vtanh.f32 %v722_v6  ;;  %v563_v53 = vmul.f32 %v3264_v23, %v522_v45  ;;  %v564_v54 = vmul.f32 %v3267_v24, %v522_v45 }
 0x10f   : > { %v3307_v13 = vpop.eup %2742  ;;  %798 = vst [vmem:[%s3309_s19 + $0x8] sm:$0xff] %v2426_v12  ;;  %v665_v15 = vpop.permute.xlu1 %664 }
 0x110   : > { %v3312_v16 = vpop.eup %2744  ;;  %v707_v18 = vmul.f32 %v3270_v27, %v665_v15  ;;  %v708_v19 = vmul.f32 %v3273_v28, %v665_v15  ;;  %v749_v20 = vpack.c.bf16 %v3297_v1, %v3307_v13 }
 0x111   : > { %v2425_v25 = vpack.c.bf16 %v3312_v16, %v3307_v13  ;;  %v750_v26 = vpack.c.bf16 %v3301_v9, %v3312_v16  ;;  %v532_v63 = vpop.permute.xlu0 %531 }
 0x112   : > { %v723_v29 = vadd.f32 %v707_v18, %v641_v14  ;;  %v724_v30 = vadd.f32 %v708_v19, %v642_v17 }
 0x113   : > { %797 = vst [vmem:[%s3309_s19] sm:$0xff] %v2425_v25  ;;  %1029 = vmatprep.mubr.bf16.mxu0 %v750_v26 }
 0x114   : > { %2750 = vtanh.f32 %v723_v29  ;;  %1030 = vmatmul.mubr.bf16.vlgmr.msra.gmra.mrb[0].mxu0 %v749_v20  ;;  %v517_v31 = vpop.permute.xlu1 %516 }
 0x115   : > { %2752 = vtanh.f32 %v724_v30  ;;  %v561_v39 = vmul.f32 %v3264_v23, %v517_v31  ;;  %v562_v40 = vmul.f32 %v3267_v24, %v517_v31 }
 0x116   : > { %v677_v6 = vpop.permute.xlu0 %676 }
 0x117   : > { %v3323_v33 = vpop.eup %2746  ;;  %v713_v14 = vmul.f32 %v3270_v27, %v677_v6  ;;  %v714_v15 = vmul.f32 %v3273_v28, %v677_v6  ;;  %v2685_v6 = vld [vmem:[#allocation7 + $0x4c] ss:$12 sps:$4 sm:$0xff]  }
 0x118   : > { %v3325_v34 = vpop.eup %2748 }
 0x119   : > { %v2427_v35 = vpack.c.bf16 %v3325_v34, %v3323_v33  ;;  %v587_v36 = vpop.permute.xlu1 %586 }
 0x11a   : > { %v627_v41 = vmul.f32 %v3258_v21, %v587_v36  ;;  %v628_v42 = vmul.f32 %v3261_v22, %v587_v36 }
 0x11b   : > { %799 = vst [vmem:[%s3309_s19 + $0x10] sm:$0xff] %v2427_v35 }
 0x11c   : > { %v643_v43 = vadd.f32 %v627_v41, %v561_v39  ;;  %v644_v44 = vadd.f32 %v628_v42, %v562_v40  ;;  %v567_v40 = vmul.f32 %v3264_v23, %v532_v63  ;;  %v568_v41 = vmul.f32 %v3267_v24, %v532_v63  ;;  %v2677_v63 = vld [vmem:[#allocation7 + $0x18] ss:$12 sps:$4 sm:$0xff]  }
 0x11d   : > { %v591_v46 = vpop.permute.xlu1 %590 }
 0x11e   : > { %v3336_v47 = vpop.eup %2750  ;;  %v725_v48 = vadd.f32 %v709_v37, %v643_v43  ;;  %v726_v49 = vadd.f32 %v710_v38, %v644_v44  ;;  %v629_v51 = vmul.f32 %v3258_v21, %v591_v46  ;;  %v630_v52 = vmul.f32 %v3261_v22, %v591_v46 }
 0x11f   : > { %v3338_v50 = vpop.eup %2752  ;;  %v751_v56 = vpack.c.bf16 %v3336_v47, %v3323_v33 }
 0x120   : > { %v2428_v55 = vpack.c.bf16 %v3338_v50, %v3336_v47  ;;  %2754 = vtanh.f32 %v725_v48  ;;  %v752_v57 = vpack.c.bf16 %v3338_v50, %v3325_v34  ;;  %v645_v59 = vadd.f32 %v629_v51, %v563_v53 }
 0x121   : > { %2756 = vtanh.f32 %v726_v49  ;;  %v646_v60 = vadd.f32 %v630_v52, %v564_v54  ;;  %v2665_v54 = vld [vmem:[#allocation5 + $0xd4] ss:$8 sps:$4 sm:$0xff]  }
 0x122   : > { %800 = vst [vmem:[%s3309_s19 + $0x18] sm:$0xff] %v2428_v55  ;;  %v673_v58 = vpop.permute.xlu1 %672  ;;  %1039 = vmatprep.mubr.bf16.mxu0 %v752_v57  ;;  %v2667_v55 = vld [vmem:[#allocation5 + $0xd0] ss:$8 sps:$4 sm:$0xff]   ;;  %1368 = vmatprep.subr.bf16.mxu1 %v2665_v54  ;;  %v2670_v57 = vld [vmem:[#allocation5 + $0xe0] ss:$8 sps:$4 sm:$0xff]  }
 0x123   : > { %v711_v61 = vmul.f32 %v3270_v27, %v673_v58  ;;  %v712_v62 = vmul.f32 %v3273_v28, %v673_v58  ;;  %1040 = vmatmul.mubr.bf16.gmra.mrb[4].mxu0 %v751_v56  ;;  %1369 = vmatpush1.bf16.msra.mxu1 %v2667_v55  ;;  %v2668_v56 = vld [vmem:[#allocation5 + $0xe4] ss:$8 sps:$4 sm:$0xff]   ;;  %v2671_v58 = vld [vmem:[#allocation5 + $0xf4] ss:$8 sps:$4 sm:$0xff]  }
 0x124   : > { %1370 = vmatprep.subr.bf16.mxu1 %v2668_v56 }
 0x125   : > { %v727_v0 = vadd.f32 %v711_v61, %v645_v59  ;;  %v728_v3 = vadd.f32 %v712_v62, %v646_v60  ;;  %v2673_v59 = vld [vmem:[#allocation5 + $0xf0] ss:$8 sps:$4 sm:$0xff]   ;;  %v2674_v60 = vld [vmem:[#allocation7] ss:$12 sps:$4 sm:$0xff]   ;;  %v2679_v62 = vld [vmem:[#allocation7 + $0x1c] ss:$12 sps:$4 sm:$0xff]  }
 0x126   : > { %v2676_v61 = vld [vmem:[#allocation7 + $0x4] ss:$12 sps:$4 sm:$0xff]  }
 0x127   : > { %2758 = vtanh.f32 %v727_v0  ;;  %v527_v5 = vpop.permute.xlu1 %526  ;;  %1371 = vmatpush1.bf16.msra.mxu1 %v2670_v57  ;;  %1832 = vmatprep.subr.bf16.mxu0 %v2676_v61  ;;  %v2682_v0 = vld [vmem:[#allocation7 + $0x34] ss:$12 sps:$4 sm:$0xff]  }
 0x128   : > { %2760 = vtanh.f32 %v728_v3  ;;  %v565_v17 = vmul.f32 %v3264_v23, %v527_v5  ;;  %v566_v18 = vmul.f32 %v3267_v24, %v527_v5  ;;  %1372 = vmatprep.subr.bf16.mxu1 %v2671_v58  ;;  %1833 = vmatpush1.bf16.msra.mxu0 %v2674_v60  ;;  %v2701_v3 = vld [vmem:[#allocation7 + $0xc8] ss:$12 sps:$4 sm:$0xff]   ;;  %v2680_v5 = vld [vmem:[#allocation7 + $0x30] ss:$12 sps:$4 sm:$0xff]  }
 0x129   : > { %1834 = vmatprep.subr.bf16.mxu0 %v2679_v62 }
 0x12a   : > { %v3353_v8 = vpop.eup %2754 }
 0x12b   : > { %v3355_v10 = vpop.eup %2756  ;;  %1373 = vmatpush1.bf16.msra.mxu1 %v2673_v59 }
 0x12c   : > { %v2429_v11 = vpack.c.bf16 %v3355_v10, %v3353_v8  ;;  %v595_v12 = vpop.permute.xlu1 %594  ;;  %1835 = vmatpush1.bf16.msra.mxu0 %v2677_v63  ;;  %2437 = vmatprep.subr.bf16.mxu1 %v2701_v3 }
 0x12d   : > { %v631_v19 = vmul.f32 %v3258_v21, %v595_v12  ;;  %v632_v20 = vmul.f32 %v3261_v22, %v595_v12  ;;  %1836 = vmatprep.subr.bf16.mxu0 %v2682_v0  ;;  %v2688_v12 = vld [vmem:[#allocation7 + $0x64] ss:$12 sps:$4 sm:$0xff]  }
 0x12e   : > { %801 = vst [vmem:[%s3309_s19 + $0x20] sm:$0xff] %v2429_v11  ;;  %v2683_v11 = vld [vmem:[#allocation7 + $0x48] ss:$12 sps:$4 sm:$0xff]  }
 0x12f   : > { %v647_v25 = vadd.f32 %v631_v19, %v565_v17  ;;  %v648_v26 = vadd.f32 %v632_v20, %v566_v18  ;;  %v2689_v17 = vld [vmem:[#allocation7 + $0x78] ss:$12 sps:$4 sm:$0xff]   ;;  %v2694_v18 = vld [vmem:[#allocation7 + $0x94] ss:$12 sps:$4 sm:$0xff]   ;;  %v2692_v19 = vld [vmem:[#allocation7 + $0x90] ss:$12 sps:$4 sm:$0xff]  }
 0x130   : > { %v599_v29 = vpop.permute.xlu1 %598  ;;  %1837 = vmatpush1.bf16.msra.mxu0 %v2680_v5  ;;  %v2697_v20 = vld [vmem:[#allocation7 + $0xac] ss:$12 sps:$4 sm:$0xff]   ;;  %v2702_v5 = vld [vmem:[#allocation7 + $0x8] ss:$12 sps:$4 sm:$0xff]  }
 0x131   : > { %v3366_v30 = vpop.eup %2758  ;;  %v729_v31 = vadd.f32 %v713_v14, %v647_v25  ;;  %v730_v32 = vadd.f32 %v714_v15, %v648_v26  ;;  %v633_v36 = vmul.f32 %v3258_v21, %v599_v29  ;;  %v634_v37 = vmul.f32 %v3261_v22, %v599_v29  ;;  %1838 = vmatprep.subr.bf16.mxu0 %v2685_v6  ;;  %v2686_v14 = vld [vmem:[#allocation7 + $0x60] ss:$12 sps:$4 sm:$0xff]   ;;  %v2691_v15 = vld [vmem:[#allocation7 + $0x7c] ss:$12 sps:$4 sm:$0xff]   ;;  %v2700_v26 = vld [vmem:[#allocation7 + $0xc4] ss:$12 sps:$4 sm:$0xff]  }
 0x132   : > { %v3368_v35 = vpop.eup %2760  ;;  %v753_v39 = vpack.c.bf16 %v3366_v30, %v3353_v8  ;;  %v2695_v25 = vld [vmem:[#allocation7 + $0xa8] ss:$12 sps:$4 sm:$0xff]   ;;  %v2698_v29 = vld [vmem:[#allocation7 + $0xc0] ss:$12 sps:$4 sm:$0xff]  }
 0x133   : > { %v2430_v38 = vpack.c.bf16 %v3368_v35, %v3366_v30  ;;  %2762 = vtanh.f32 %v729_v31  ;;  %v754_v42 = vpack.c.bf16 %v3368_v35, %v3355_v10  ;;  %v649_v43 = vadd.f32 %v633_v36, %v567_v40  ;;  %v2705_v31 = vld [vmem:[#allocation7 + $0xdc] ss:$12 sps:$4 sm:$0xff]   ;;  %v2710_v36 = vld [vmem:[#allocation7 + $0xf4] ss:$12 sps:$4 sm:$0xff]   ;;  %v2720_v40 = vld [vmem:[#allocation7 + $0x124] ss:$12 sps:$4 sm:$0xff]  }
 0x134   : > { %2764 = vtanh.f32 %v730_v32  ;;  %v650_v22 = vadd.f32 %v634_v37, %v568_v41  ;;  %1839 = vmatpush1.bf16.msra.mxu0 %v2683_v11  ;;  %v2703_v32 = vld [vmem:[#allocation7 + $0xd8] ss:$12 sps:$4 sm:$0xff]   ;;  %v2708_v37 = vld [vmem:[#allocation7 + $0xf0] ss:$12 sps:$4 sm:$0xff]   ;;  %v2718_v41 = vld [vmem:[#allocation7 + $0x120] ss:$12 sps:$4 sm:$0xff]  }
 0x135   : > { %802 = vst [vmem:[%s3309_s19 + $0x28] sm:$0xff] %v2430_v38  ;;  %v681_v21 = vpop.permute.xlu1 %680  ;;  %1049 = vmatprep.mubr.bf16.mxu0 %v754_v42  ;;  %1840 = vmatprep.subr.bf16.mxu0 %v2688_v12  ;;  %v2715_v38 = vld [vmem:[#allocation7 + $0x10c] ss:$12 sps:$4 sm:$0xff]   ;;  %v1070_v42 = vld [vmem:[%s3769_s3] sm:$0x3] }
 0x136   : > { %v715_v44 = vmul.f32 %v3270_v27, %v681_v21  ;;  %v716_v45 = vmul.f32 %v3273_v28, %v681_v21  ;;  %1050 = vmatmul.mubr.bf16.gmra.mrb[8].mxu0 %v753_v39  ;;  %v2713_v39 = vld [vmem:[#allocation7 + $0x108] ss:$12 sps:$4 sm:$0xff]   ;;  %v1098_v21 = vld [vmem:[%s3770_s4] sm:$0x3]  ;;  %v2711_v12 = vld [vmem:[#allocation7 + $0xf8] ss:$12 sps:$4 sm:$0xff]  }
 0x137   : > { %v2706_v6 = vld [vmem:[#allocation7 + $0xe0] ss:$12 sps:$4 sm:$0xff]  }
 0x138   : > { %v731_v46 = vadd.f32 %v715_v44, %v649_v43  ;;  %v732_v23 = vadd.f32 %v716_v45, %v650_v22  ;;  %1841 = vmatpush1.bf16.msra.mxu0 %v2686_v14  ;;  %v3408_v43 = vrot.slane %v1070_v42, %v3247_v4  ;;  %v3411_v22 = vrot.slane %v1070_v42, %v3245_v2  ;;  %v2707_v11 = vld [vmem:[#allocation7 + $0x20] ss:$12 sps:$4 sm:$0xff]   ;;  %v2721_v42 = vld [vmem:[#allocation7 + $0x128] ss:$12 sps:$4 sm:$0xff]  }
 0x139   : > { %1842 = vmatprep.subr.bf16.mxu0 %v2691_v15  ;;  %v3414_v44 = vrot.slane %v1098_v21, %v3247_v4 }
 0x13a   : > { %2766 = vtanh.f32 %v731_v46  ;;  %v3417_v46 = vrot.slane %v1098_v21, %v3245_v2 }
 0x13b   : > { %2768 = vtanh.f32 %v732_v23 }
 0x13c   : > { %1843 = vmatpush1.bf16.msra.mxu0 %v2689_v17 }
 0x13d   : > { %v3383_v24 = vpop.eup %2762  ;;  %1844 = vmatprep.subr.bf16.mxu0 %v2694_v18 }
 0x13e   : > { %v3385_v48 = vpop.eup %2764 }
 0x13f   : > { %v2431_v49 = vpack.c.bf16 %v3385_v48, %v3383_v24 }
 0x140   : > { %1845 = vmatpush1.bf16.msra.mxu0 %v2692_v19 }
 0x141   : > { %803 = vst [vmem:[%s3309_s19 + $0x30] sm:$0xff] %v2431_v49  ;;  %1846 = vmatprep.subr.bf16.mxu0 %v2697_v20  ;;  %v2712_v20 = vld [vmem:[#allocation7 + $0x38] ss:$12 sps:$4 sm:$0xff]  }
 0x144   : > { %v3390_v51 = vpop.eup %2766  ;;  %1847 = vmatpush1.bf16.msra.mxu0 %v2695_v25 }
 0x145   : > { %v3392_v52 = vpop.eup %2768  ;;  %v755_v27 = vpack.c.bf16 %v3390_v51, %v3383_v24  ;;  %1848 = vmatprep.subr.bf16.mxu0 %v2700_v26 }
 0x146   : > { %v2432_v28 = vpack.c.bf16 %v3392_v52, %v3390_v51  ;;  %v756_v53 = vpack.c.bf16 %v3392_v52, %v3385_v48 }
 0x148   : > { %804 = vst [vmem:[%s3309_s19 + $0x38] sm:$0xff] %v2432_v28  ;;  %1059 = vmatprep.mubr.bf16.mxu0 %v756_v53  ;;  %1849 = vmatpush1.bf16.msra.mxu0 %v2698_v29 }
 0x149   : > { %1060 = vmatmul.mubr.bf16.gmra.mrb[12].mxu0 %v755_v27  ;;  %1850 = vmatprep.subr.bf16.mxu0 %v2705_v31  ;;  %v2716_v31 = vld [vmem:[#allocation7 + $0x110] ss:$12 sps:$4 sm:$0xff]  }
 0x14c   : > { %1851 = vmatpush1.bf16.msra.mxu0 %v2703_v32 }
 0x14d   : > { %1852 = vmatprep.subr.bf16.mxu0 %v2710_v36 }
 0x150   : > { %1853 = vmatpush1.bf16.msra.mxu0 %v2708_v37 }
 0x151   : > { %1854 = vmatprep.subr.bf16.mxu0 %v2715_v38 }
 0x154   : > { %1855 = vmatpush1.bf16.msra.mxu0 %v2713_v39  ;;  %v2717_v39 = vld [vmem:[#allocation7 + $0x50] ss:$12 sps:$4 sm:$0xff]  }
 0x155   : > { %1856 = vmatprep.subr.bf16.mxu0 %v2720_v40 }
 0x158   : > { %1857 = vmatpush1.bf16.msra.mxu0 %v2718_v41 }
 0x1e7   : > { %v1031_v45 = vpop.f32.mrb[0].mxu0 }
 0x1e8   : > { %v1082_v23 = vmul.f32 %v3408_v43, %v1031_v45  ;;  %v1033_v49 = vpop.f32.mrb[1].mxu0 }
 0x1e9   : > { %v1083_v27 = vmul.f32 %v3411_v22, %v1033_v49  ;;  %v1035_v28 = vpop.f32.mrb[2].mxu0 }
 0x1ea   : > { %v1110_v53 = vadd.f32 %v3414_v44, %v1082_v23  ;;  %v1084_v54 = vmul.f32 %v3408_v43, %v1035_v28  ;;  %v1037_v55 = vpop.f32.mrb[3].mxu0 }
 0x1eb   : > { %v1085_v56 = vmul.f32 %v3411_v22, %v1037_v55  ;;  %v1111_v57 = vadd.f32 %v3417_v46, %v1083_v27  ;;  %v2722_v27 = vld [vmem:[#allocation7 + $0x68] ss:$12 sps:$4 sm:$0xff]  }
 0x1ec   : > { %v1112_v58 = vadd.f32 %v3414_v44, %v1084_v54  ;;  %v1126_v60 = vmax.f32 %v1110_v53, 0.0 }
 0x1ed   : > { %v1113_v59 = vadd.f32 %v3417_v46, %v1085_v56  ;;  %v1127_v62 = vmax.f32 %v1111_v57, 0.0 }
 0x1ee   : > { %v1128_v61 = vmax.f32 %v1112_v58, 0.0 }
 0x1ef   : > { %v1129_v63 = vmax.f32 %v1113_v59, 0.0 }
 0x1f0   : > { %v1142_v0 = vpack.c.bf16 %v1128_v61, %v1126_v60 }
 0x1f1   : > { %v1143_v3 = vpack.c.bf16 %v1129_v63, %v1127_v62 }
 0x1f3   : > { %1374 = vmatprep.mubr.bf16.mxu1 %v1143_v3 }
 0x1f4   : > { %1375 = vmatmul.mubr.bf16.vlgmr.msra.gmra.mrb[0].mxu1 %v1142_v0 }
 0x1f5   : > { %2438 = vmatpush3.bf16.msra.mxu1 %v2702_v5 }
 0x1f6   : > { %2439 = vmatprep.subr.bf16.mxu1 %v2706_v6  ;;  %v1041_v14 = vpop.f32.mrb[4].mxu0 }
 0x1f7   : > { %v1086_v15 = vmul.f32 %v3408_v43, %v1041_v14  ;;  %v1043_v17 = vpop.f32.mrb[5].mxu0 }
 0x1f8   : > { %v1087_v18 = vmul.f32 %v3411_v22, %v1043_v17  ;;  %v1045_v19 = vpop.f32.mrb[6].mxu0 }
 0x1f9   : > { %2440 = vmatpush3.bf16.msra.mxu1 %v2707_v11  ;;  %v1114_v25 = vadd.f32 %v3414_v44, %v1086_v15  ;;  %v1088_v26 = vmul.f32 %v3408_v43, %v1045_v19  ;;  %v1047_v29 = vpop.f32.mrb[7].mxu0 }
 0x1fa   : > { %2441 = vmatprep.subr.bf16.mxu1 %v2711_v12  ;;  %v1115_v32 = vadd.f32 %v3417_v46, %v1087_v18  ;;  %v1089_v36 = vmul.f32 %v3411_v22, %v1047_v29 }
 0x1fb   : > { %v1116_v37 = vadd.f32 %v3414_v44, %v1088_v26  ;;  %v1130_v40 = vmax.f32 %v1114_v25, 0.0 }
 0x1fc   : > { %v1117_v38 = vadd.f32 %v3417_v46, %v1089_v36  ;;  %v1131_v21 = vmax.f32 %v1115_v32, 0.0 }
 0x1fd   : > { %2442 = vmatpush3.bf16.msra.mxu1 %v2712_v20  ;;  %v1132_v41 = vmax.f32 %v1116_v37, 0.0 }
 0x1fe   : > { %2443 = vmatprep.subr.bf16.mxu1 %v2716_v31  ;;  %v1133_v45 = vmax.f32 %v1117_v38, 0.0 }
 0x1ff   : > { %v1144_v23 = vpack.c.bf16 %v1132_v41, %v1130_v40 }
 0x200   : > { %v1145_v49 = vpack.c.bf16 %v1133_v45, %v1131_v21  ;;  %v2725_v21 = vld [vmem:[#allocation7 + $0x13c] ss:$12 sps:$4 sm:$0xff]   ;;  %v2726_v45 = vld [vmem:[#allocation7 + $0x140] ss:$12 sps:$4 sm:$0xff]  }
 0x201   : > { %2444 = vmatpush3.bf16.msra.mxu1 %v2717_v39  ;;  %1858 = vmatprep.subr.bf16.mxu0 %v2725_v21 }
 0x202   : > { %2445 = vmatprep.subr.bf16.mxu1 %v2721_v42  ;;  %1384 = vmatprep.mubr.bf16.mxu1 %v1145_v49  ;;  %v2728_v49 = vld [vmem:[#allocation7 + $0x150] ss:$12 sps:$4 sm:$0xff]  }
 0x203   : > { %1385 = vmatmul.mubr.bf16.gmra.mrb[4].mxu1 %v1144_v23  ;;  %v2727_v23 = vld [vmem:[#allocation7 + $0x80] ss:$12 sps:$4 sm:$0xff]  }
 0x205   : > { %2446 = vmatpush3.bf16.msra.mxu1 %v2722_v27  ;;  %v2735_v27 = vld [vmem:[#allocation7 + $0x16c] ss:$12 sps:$4 sm:$0xff]  }
 0x206   : > { %2447 = vmatprep.subr.bf16.mxu1 %v2726_v45 }
 0x209   : > { %v1051_v28 = vpop.f32.mrb[8].mxu0  ;;  %2448 = vmatpush3.bf16.msra.mxu1 %v2727_v23 }
 0x20a   : > { %v1090_v53 = vmul.f32 %v3408_v43, %v1051_v28  ;;  %v1053_v54 = vpop.f32.mrb[9].mxu0  ;;  %v2736_v28 = vld [vmem:[#allocation7 + $0x170] ss:$12 sps:$4 sm:$0xff]  }
 0x20b   : > { %v1091_v55 = vmul.f32 %v3411_v22, %v1053_v54  ;;  %v1055_v56 = vpop.f32.mrb[10].mxu0  ;;  %v2737_v54 = vld [vmem:[#allocation7 + $0xb0] ss:$12 sps:$4 sm:$0xff]  }
 0x20c   : > { %v1118_v57 = vadd.f32 %v3414_v44, %v1090_v53  ;;  %v1092_v58 = vmul.f32 %v3408_v43, %v1055_v56  ;;  %v1057_v59 = vpop.f32.mrb[11].mxu0  ;;  %v2733_v53 = vld [vmem:[#allocation7 + $0x168] ss:$12 sps:$4 sm:$0xff]   ;;  %v1443_v56 = vld [vmem:[%s3773_s7] sm:$0x3] }
 0x20d   : > { %v1119_v60 = vadd.f32 %v3417_v46, %v1091_v55  ;;  %v1093_v61 = vmul.f32 %v3411_v22, %v1057_v59  ;;  %v1415_v55 = vld [vmem:[%s3772_s6] sm:$0x3]  ;;  %v3464_v59 = vrot.slane %v1443_v56, %v3247_v4 }
 0x20e   : > { %v1120_v62 = vadd.f32 %v3414_v44, %v1092_v58  ;;  %v1134_v0 = vmax.f32 %v1118_v57, 0.0  ;;  %v3458_v57 = vrot.slane %v1415_v55, %v3247_v4  ;;  %v3461_v58 = vrot.slane %v1415_v55, %v3245_v2 }
 0x20f   : > { %v1121_v63 = vadd.f32 %v3417_v46, %v1093_v61  ;;  %v1135_v5 = vmax.f32 %v1119_v60, 0.0  ;;  %v3467_v61 = vrot.slane %v1443_v56, %v3245_v2 }
 0x210   : > { %v1136_v3 = vmax.f32 %v1120_v62, 0.0 }
 0x211   : > { %v1137_v6 = vmax.f32 %v1121_v63, 0.0 }
 0x212   : > { %v1146_v11 = vpack.c.bf16 %v1136_v3, %v1134_v0 }
 0x213   : > { %v1147_v12 = vpack.c.bf16 %v1137_v6, %v1135_v5 }
 0x215   : > { %1394 = vmatprep.mubr.bf16.mxu1 %v1147_v12 }
 0x216   : > { %1395 = vmatmul.mubr.bf16.gmra.mrb[8].mxu1 %v1146_v11 }
 0x21c   : > { %v1061_v14 = vpop.f32.mrb[12].mxu0 }
 0x21d   : > { %v1094_v15 = vmul.f32 %v3408_v43, %v1061_v14  ;;  %v1063_v17 = vpop.f32.mrb[13].mxu0 }
 0x21e   : > { %v1095_v18 = vmul.f32 %v3411_v22, %v1063_v17  ;;  %v1065_v19 = vpop.f32.mrb[14].mxu0 }
 0x21f   : > { %v1122_v20 = vadd.f32 %v3414_v44, %v1094_v15  ;;  %v1096_v25 = vmul.f32 %v3408_v43, %v1065_v19  ;;  %v1067_v26 = vpop.f32.mrb[15].mxu0  ;;  %v2723_v43 = vld [vmem:[#allocation7 + $0x138] ss:$12 sps:$4 sm:$0xff]  }
 0x220   : > { %v1123_v29 = vadd.f32 %v3417_v46, %v1095_v18  ;;  %v1097_v31 = vmul.f32 %v3411_v22, %v1067_v26  ;;  %1859 = vmatpush1.bf16.msra.mxu0 %v2723_v43  ;;  %v2730_v22 = vld [vmem:[#allocation7 + $0x154] ss:$12 sps:$4 sm:$0xff]  }
 0x221   : > { %v1124_v32 = vadd.f32 %v3414_v44, %v1096_v25  ;;  %v1138_v37 = vmax.f32 %v1122_v20, 0.0  ;;  %v2731_v44 = vld [vmem:[#allocation7 + $0x158] ss:$12 sps:$4 sm:$0xff]   ;;  %1860 = vmatprep.subr.bf16.mxu0 %v2730_v22 }
 0x222   : > { %v1125_v36 = vadd.f32 %v3417_v46, %v1097_v31  ;;  %v1139_v39 = vmax.f32 %v1123_v29, 0.0  ;;  %v2732_v46 = vld [vmem:[#allocation7 + $0x98] ss:$12 sps:$4 sm:$0xff]   ;;  %2449 = vmatprep.subr.bf16.mxu1 %v2731_v44 }
 0x223   : > { %v1140_v38 = vmax.f32 %v1124_v32, 0.0  ;;  %2450 = vmatpush3.bf16.msra.mxu1 %v2732_v46 }
 0x224   : > { %v1141_v40 = vmax.f32 %v1125_v36, 0.0  ;;  %1861 = vmatpush1.bf16.msra.mxu0 %v2728_v49  ;;  %2451 = vmatprep.subr.bf16.mxu1 %v2736_v28 }
 0x225   : > { %v1148_v41 = vpack.c.bf16 %v1140_v38, %v1138_v37  ;;  %1862 = vmatprep.subr.bf16.mxu0 %v2735_v27 }
 0x226   : > { %v1149_v42 = vpack.c.bf16 %v1141_v40, %v1139_v39 }
 0x227   : > { %2452 = vmatpush3.bf16.msra.mxu1 %v2737_v54 }
 0x228   : > { %1404 = vmatprep.mubr.bf16.mxu1 %v1149_v42  ;;  %1863 = vmatpush1.bf16.msra.mxu0 %v2733_v53 }
 0x229   : > { %1405 = vmatmul.mubr.bf16.gmra.mrb[12].mxu1 %v1148_v41 }
 0x2c7   : > { %v1376_v60 = vpop.f32.mrb[0].mxu1 }
 0x2c8   : > { %v1427_v62 = vmul.f32 %v3458_v57, %v1376_v60  ;;  %v1378_v63 = vpop.f32.mrb[1].mxu1 }
 0x2c9   : > { %v1428_v0 = vmul.f32 %v3461_v58, %v1378_v63  ;;  %v1380_v3 = vpop.f32.mrb[2].mxu1 }
 0x2ca   : > { %v1455_v5 = vadd.f32 %v3464_v59, %v1427_v62  ;;  %v1429_v6 = vmul.f32 %v3458_v57, %v1380_v3  ;;  %v1382_v11 = vpop.f32.mrb[3].mxu1 }
 0x2cb   : > { %v1456_v12 = vadd.f32 %v3467_v61, %v1428_v0  ;;  %v1430_v14 = vmul.f32 %v3461_v58, %v1382_v11 }
 0x2cc   : > { %v1457_v15 = vadd.f32 %v3464_v59, %v1429_v6  ;;  %v1471_v18 = vmax.f32 %v1455_v5, 0.0 }
 0x2cd   : > { %v1458_v17 = vadd.f32 %v3467_v61, %v1430_v14  ;;  %v1472_v20 = vmax.f32 %v1456_v12, 0.0 }
 0x2ce   : > { %v1473_v19 = vmax.f32 %v1457_v15, 0.0 }
 0x2cf   : > { %v1474_v25 = vmax.f32 %v1458_v17, 0.0 }
 0x2d0   : > { %v1487_v26 = vpack.c.bf16 %v1473_v19, %v1471_v18 }
 0x2d1   : > { %v1488_v29 = vpack.c.bf16 %v1474_v25, %v1472_v20 }
 0x2d3   : > { %1864 = vmatprep.mubr.bf16.mxu0 %v1488_v29  ;;  %1937 = vmatprep.mubr.bf16.mxu1 %v1488_v29 }
 0x2d4   : > { %1865 = vmatmul.mubr.bf16.vlgmr.msra.gmra.mrb[16].mxu0 %v1487_v26  ;;  %1938 = vmatmul.mubr.bf16.vlgmr.msra.gmra.mrb[16].mxu1 %v1487_v26 }
 0x2d6   : > { %v1386_v31 = vpop.f32.mrb[4].mxu1 }
 0x2d7   : > { %v1431_v32 = vmul.f32 %v3458_v57, %v1386_v31  ;;  %v1388_v36 = vpop.f32.mrb[5].mxu1 }
 0x2d8   : > { %v1432_v37 = vmul.f32 %v3461_v58, %v1388_v36  ;;  %v1390_v38 = vpop.f32.mrb[6].mxu1 }
 0x2d9   : > { %v1459_v39 = vadd.f32 %v3464_v59, %v1431_v32  ;;  %v1433_v40 = vmul.f32 %v3458_v57, %v1390_v38  ;;  %v1392_v41 = vpop.f32.mrb[7].mxu1 }
 0x2da   : > { %v1460_v42 = vadd.f32 %v3467_v61, %v1432_v37  ;;  %v1434_v21 = vmul.f32 %v3461_v58, %v1392_v41 }
 0x2db   : > { %v1461_v45 = vadd.f32 %v3464_v59, %v1433_v40  ;;  %v1475_v23 = vmax.f32 %v1459_v39, 0.0 }
 0x2dc   : > { %v1462_v43 = vadd.f32 %v3467_v61, %v1434_v21  ;;  %v1476_v44 = vmax.f32 %v1460_v42, 0.0 }
 0x2dd   : > { %v1477_v22 = vmax.f32 %v1461_v45, 0.0 }
 0x2de   : > { %v1478_v49 = vmax.f32 %v1462_v43, 0.0 }
 0x2df   : > { %v1489_v46 = vpack.c.bf16 %v1477_v22, %v1475_v23 }
 0x2e0   : > { %v1490_v27 = vpack.c.bf16 %v1478_v49, %v1476_v44 }
 0x2e2   : > { %1874 = vmatprep.mubr.bf16.mxu0 %v1490_v27  ;;  %1945 = vmatprep.mubr.bf16.mxu1 %v1490_v27 }
 0x2e3   : > { %1875 = vmatmul.mubr.bf16.gmra.mrb[20].mxu0 %v1489_v46  ;;  %1946 = vmatmul.mubr.bf16.gmra.mrb[20].mxu1 %v1489_v46 }
 0x2e9   : > { %v1396_v28 = vpop.f32.mrb[8].mxu1 }
 0x2ea   : > { %v1435_v53 = vmul.f32 %v3458_v57, %v1396_v28  ;;  %v1398_v54 = vpop.f32.mrb[9].mxu1 }
 0x2eb   : > { %v1436_v55 = vmul.f32 %v3461_v58, %v1398_v54  ;;  %v1400_v56 = vpop.f32.mrb[10].mxu1 }
 0x2ec   : > { %v1463_v60 = vadd.f32 %v3464_v59, %v1435_v53  ;;  %v1437_v62 = vmul.f32 %v3458_v57, %v1400_v56  ;;  %v1402_v63 = vpop.f32.mrb[11].mxu1 }
 0x2ed   : > { %v1464_v0 = vadd.f32 %v3467_v61, %v1436_v55  ;;  %v1438_v3 = vmul.f32 %v3461_v58, %v1402_v63 }
 0x2ee   : > { %v1465_v5 = vadd.f32 %v3464_v59, %v1437_v62  ;;  %v1479_v11 = vmax.f32 %v1463_v60, 0.0 }
 0x2ef   : > { %v1466_v6 = vadd.f32 %v3467_v61, %v1438_v3  ;;  %v1480_v14 = vmax.f32 %v1464_v0, 0.0  ;;  %v2786_v3 = vld [vmem:[%s3222_s11] sm:$0xff] }
 0x2f0   : > { %v1481_v12 = vmax.f32 %v1465_v5, 0.0 }
 0x2f1   : > { %v1482_v15 = vmax.f32 %v1466_v6, 0.0 }
 0x2f2   : > { %v1491_v17 = vpack.c.bf16 %v1481_v12, %v1479_v11 }
 0x2f3   : > { %v1492_v18 = vpack.c.bf16 %v1482_v15, %v1480_v14 }
 0x2f5   : > { %1884 = vmatprep.mubr.bf16.mxu0 %v1492_v18  ;;  %1953 = vmatprep.mubr.bf16.mxu1 %v1492_v18 }
 0x2f6   : > { %1885 = vmatmul.mubr.bf16.gmra.mrb[24].mxu0 %v1491_v17  ;;  %1954 = vmatmul.mubr.bf16.gmra.mrb[24].mxu1 %v1491_v17 }
 0x2fc   : > { %v1406_v19 = vpop.f32.mrb[12].mxu1 }
 0x2fd   : > { %v1439_v20 = vmul.f32 %v3458_v57, %v1406_v19  ;;  %v1408_v25 = vpop.f32.mrb[13].mxu1 }
 0x2fe   : > { %v1440_v26 = vmul.f32 %v3461_v58, %v1408_v25  ;;  %v1410_v29 = vpop.f32.mrb[14].mxu1 }
 0x2ff   : > { %v1467_v31 = vadd.f32 %v3464_v59, %v1439_v20  ;;  %v1441_v32 = vmul.f32 %v3458_v57, %v1410_v29  ;;  %v1412_v36 = vpop.f32.mrb[15].mxu1  ;;  %v1559_v57 = vld [vmem:[%s3775_s9] sm:$0x7] }
 0x300   : > { %v1468_v37 = vadd.f32 %v3467_v61, %v1440_v26  ;;  %v1442_v38 = vmul.f32 %v3461_v58, %v1412_v36  ;;  %v3505_v58 = vrot.slane %v1559_v57, %v3247_v4  ;;  %v3511_v44 = vrot.slane %v1559_v57, %v3252_v7 }
 0x301   : > { %v1469_v39 = vadd.f32 %v3464_v59, %v1441_v32  ;;  %v1483_v41 = vmax.f32 %v1467_v31, 0.0  ;;  %v3508_v59 = vrot.slane %v1559_v57, %v3245_v2  ;;  %v2788_v57 = vld [vmem:[%s3222_s11 + $0x10] sm:$0xff] }
 0x302   : > { %v1470_v40 = vadd.f32 %v3467_v61, %v1442_v38  ;;  %v1484_v21 = vmax.f32 %v1468_v37, 0.0 }
 0x303   : > { %v1485_v42 = vmax.f32 %v1469_v39, 0.0 }
 0x304   : > { %v1486_v45 = vmax.f32 %v1470_v40, 0.0 }
 0x305   : > { %v1493_v43 = vpack.c.bf16 %v1485_v42, %v1483_v41 }
 0x306   : > { %v1494_v23 = vpack.c.bf16 %v1486_v45, %v1484_v21 }
 0x308   : > { %1894 = vmatprep.mubr.bf16.mxu0 %v1494_v23  ;;  %1961 = vmatprep.mubr.bf16.mxu1 %v1494_v23 }
 0x309   : > { %1895 = vmatmul.mubr.bf16.gmra.mrb[28].mxu0 %v1493_v43  ;;  %1962 = vmatmul.mubr.bf16.gmra.mrb[28].mxu1 %v1493_v43 }
 0x3a7   : > { %v1866_v61 = vpop.f32.mrb[16].mxu0  ;;  %v2453_v22 = vpop.f32.mrb[16].mxu1 }
 0x3a8   : > { %v1867_v49 = vadd.f32 %v1866_v61, %v3505_v58  ;;  %v1868_v46 = vpop.f32.mrb[17].mxu0  ;;  %v2454_v27 = vpop.f32.mrb[17].mxu1 }
 0x3a9   : > { %v1869_v28 = vadd.f32 %v1868_v46, %v3508_v59  ;;  %v2455_v53 = vadd.f32 %v2454_v27, %v2453_v22  ;;  %v1870_v54 = vpop.f32.mrb[18].mxu0  ;;  %v2456_v4 = vpop.f32.mrb[18].mxu1 }
 0x3aa   : > { %v3516_v55 = vadd.f32 %v3307_v13, %v1867_v49  ;;  %v1871_v2 = vadd.f32 %v1870_v54, %v3505_v58  ;;  %v1872_v56 = vpop.f32.mrb[19].mxu0  ;;  %v2457_v60 = vpop.f32.mrb[19].mxu1 }
 0x3ab   : > { %v3520_v7 = vadd.f32 %v3312_v16, %v1869_v28  ;;  %v1940_v62 = vadd.f32 %v2455_v53, %v3511_v44  ;;  %v1873_v63 = vadd.f32 %v1872_v56, %v3508_v59  ;;  %v2458_v0 = vadd.f32 %v2457_v60, %v2456_v4 }
 0x3ac   : > { %v3532_v13 = vadd.f32 %v3297_v1, %v1871_v2  ;;  %v2003_v16 = vmul.f32 %v3516_v55, %v3516_v55  ;;  %v2787_v1 = vld [vmem:[%s3222_s11 + $0x8] sm:$0xff] }
 0x3ad   : > { %v1970_v5 = vadd.f32 %v2786_v3, %v1940_v62  ;;  %v3538_v6 = vadd.f32 %v3301_v9, %v1873_v63  ;;  %v1943_v11 = vadd.f32 %v2458_v0, %v3511_v44  ;;  %v2004_v12 = vmul.f32 %v3520_v7, %v3520_v7 }
 0x3ae   : > { %v2005_v14 = vmul.f32 %v3532_v13, %v3532_v13 }
 0x3af   : > { %1979 = vst.msk [vmem:[%s3529_s26] sm:$0xff] %vm1978_vm0, %v1970_v5  ;;  %v1971_v15 = vadd.f32 %v2787_v1, %v1943_v11  ;;  %v2019_v17 = vadd.f32 %v2004_v12, %v2003_v16  ;;  %v2006_v18 = vmul.f32 %v3538_v6, %v3538_v6 }
 0x3b1   : > { %1980 = vst.msk [vmem:[%s3529_s26 + $0x8] sm:$0xff] %vm1978_vm0, %v1971_v15  ;;  %2020 = vadd.xlane.f32.xlu1 %v2019_v17  ;;  %v2022_v9 = vadd.f32 %v2006_v18, %v2005_v14 }
 0x3b3   : > { %2023 = vadd.xlane.f32.xlu0 %v2022_v9  ;;  %v2790_v9 = vld [vmem:[%s3222_s11 + $0x20] sm:$0xff] }
 0x3b6   : > { %v1876_v19 = vpop.f32.mrb[20].mxu0  ;;  %v2459_v20 = vpop.f32.mrb[20].mxu1 }
 0x3b7   : > { %v1877_v25 = vadd.f32 %v1876_v19, %v3505_v58  ;;  %v1878_v26 = vpop.f32.mrb[21].mxu0  ;;  %v2460_v29 = vpop.f32.mrb[21].mxu1 }
 0x3b8   : > { %v1879_v31 = vadd.f32 %v1878_v26, %v3508_v59  ;;  %v2461_v32 = vadd.f32 %v2460_v29, %v2459_v20  ;;  %v1880_v36 = vpop.f32.mrb[22].mxu0  ;;  %v2462_v37 = vpop.f32.mrb[22].mxu1 }
 0x3b9   : > { %v3555_v38 = vadd.f32 %v3323_v33, %v1877_v25  ;;  %v1881_v39 = vadd.f32 %v1880_v36, %v3505_v58  ;;  %v1882_v40 = vpop.f32.mrb[23].mxu0  ;;  %v2463_v41 = vpop.f32.mrb[23].mxu1 }
 0x3ba   : > { %v3559_v42 = vadd.f32 %v3325_v34, %v1879_v31  ;;  %v1948_v21 = vadd.f32 %v2461_v32, %v3511_v44  ;;  %v1883_v45 = vadd.f32 %v1882_v40, %v3508_v59  ;;  %v2464_v43 = vadd.f32 %v2463_v41, %v2462_v37 }
 0x3bb   : > { %v3564_v23 = vadd.f32 %v3336_v47, %v1881_v39  ;;  %v2007_v33 = vmul.f32 %v3555_v38, %v3555_v38  ;;  %v2789_v47 = vld [vmem:[%s3222_s11 + $0x18] sm:$0xff] }
 0x3bc   : > { %v1972_v61 = vadd.f32 %v2788_v57, %v1948_v21  ;;  %v3570_v22 = vadd.f32 %v3338_v50, %v1883_v45  ;;  %v1951_v34 = vadd.f32 %v2464_v43, %v3511_v44  ;;  %v2008_v49 = vmul.f32 %v3559_v42, %v3559_v42 }
 0x3bd   : > { %v2009_v46 = vmul.f32 %v3564_v23, %v3564_v23 }
 0x3be   : > { %1981 = vst.msk [vmem:[%s3529_s26 + $0x10] sm:$0xff] %vm1978_vm0, %v1972_v61  ;;  %v1973_v27 = vadd.f32 %v2789_v47, %v1951_v34  ;;  %v2025_v28 = vadd.f32 %v2008_v49, %v2007_v33  ;;  %v2010_v53 = vmul.f32 %v3570_v22, %v3570_v22 }
 0x3c0   : > { %1982 = vst.msk [vmem:[%s3529_s26 + $0x18] sm:$0xff] %vm1978_vm0, %v1973_v27  ;;  %2026 = vadd.xlane.f32.xlu0 %v2025_v28  ;;  %v2028_v50 = vadd.f32 %v2010_v53, %v2009_v46 }
 0x3c2   : > { %2029 = vadd.xlane.f32.xlu1 %v2028_v50 }
 0x3c9   : > { %v1886_v54 = vpop.f32.mrb[24].mxu0  ;;  %v2465_v4 = vpop.f32.mrb[24].mxu1 }
 0x3ca   : > { %v1887_v2 = vadd.f32 %v1886_v54, %v3505_v58  ;;  %v1888_v56 = vpop.f32.mrb[25].mxu0  ;;  %v2466_v60 = vpop.f32.mrb[25].mxu1 }
 0x3cb   : > { %v1889_v62 = vadd.f32 %v1888_v56, %v3508_v59  ;;  %v2467_v63 = vadd.f32 %v2466_v60, %v2465_v4  ;;  %v1890_v0 = vpop.f32.mrb[26].mxu0  ;;  %v2468_v16 = vpop.f32.mrb[26].mxu1  ;;  %v2793_v4 = vld [vmem:[%s3222_s11 + $0x38] sm:$0xff] }
 0x3cc   : > { %v3587_v3 = vadd.f32 %v3353_v8, %v1887_v2  ;;  %v1891_v5 = vadd.f32 %v1890_v0, %v3505_v58  ;;  %v1892_v11 = vpop.f32.mrb[27].mxu0  ;;  %v2469_v12 = vpop.f32.mrb[27].mxu1 }
 0x3cd   : > { %v3591_v14 = vadd.f32 %v3355_v10, %v1889_v62  ;;  %v1956_v1 = vadd.f32 %v2467_v63, %v3511_v44  ;;  %v1893_v15 = vadd.f32 %v1892_v11, %v3508_v59  ;;  %v2470_v17 = vadd.f32 %v2469_v12, %v2468_v16 }
 0x3ce   : > { %v3596_v18 = vadd.f32 %v3366_v30, %v1891_v5  ;;  %v2011_v8 = vmul.f32 %v3587_v3, %v3587_v3  ;;  %v2791_v30 = vld [vmem:[%s3222_s11 + $0x28] sm:$0xff] }
 0x3cf   : > { %v1974_v19 = vadd.f32 %v2790_v9, %v1956_v1  ;;  %v3602_v20 = vadd.f32 %v3368_v35, %v1893_v15  ;;  %v1959_v10 = vadd.f32 %v2470_v17, %v3511_v44  ;;  %v2012_v25 = vmul.f32 %v3591_v14, %v3591_v14 }
 0x3d0   : > { %v2013_v26 = vmul.f32 %v3596_v18, %v3596_v18 }
 0x3d1   : > { %1983 = vst.msk [vmem:[%s3529_s26 + $0x20] sm:$0xff] %vm1978_vm0, %v1974_v19  ;;  %v1975_v29 = vadd.f32 %v2791_v30, %v1959_v10  ;;  %v2031_v31 = vadd.f32 %v2012_v25, %v2011_v8  ;;  %v2014_v32 = vmul.f32 %v3602_v20, %v3602_v20 }
 0x3d3   : > { %1984 = vst.msk [vmem:[%s3529_s26 + $0x28] sm:$0xff] %vm1978_vm0, %v1975_v29  ;;  %2032 = vadd.xlane.f32.xlu0 %v2031_v31  ;;  %v2034_v35 = vadd.f32 %v2014_v32, %v2013_v26 }
 0x3d5   : > { %2035 = vadd.xlane.f32.xlu1 %v2034_v35 }
 0x3dc   : > { %v1896_v36 = vpop.f32.mrb[28].mxu0  ;;  %v2471_v37 = vpop.f32.mrb[28].mxu1 }
 0x3dd   : > { %v1897_v39 = vadd.f32 %v1896_v36, %v3505_v58  ;;  %v1898_v40 = vpop.f32.mrb[29].mxu0  ;;  %v2472_v41 = vpop.f32.mrb[29].mxu1 }
 0x3de   : > { %v1899_v21 = vadd.f32 %v1898_v40, %v3508_v59  ;;  %v2473_v45 = vadd.f32 %v2472_v41, %v2471_v37  ;;  %v1900_v43 = vpop.f32.mrb[30].mxu0  ;;  %v2474_v33 = vpop.f32.mrb[30].mxu1 }
 0x3df   : > { %v3619_v57 = vadd.f32 %v3383_v24, %v1897_v39  ;;  %v1901_v61 = vadd.f32 %v1900_v43, %v3505_v58  ;;  %v1902_v34 = vpop.f32.mrb[31].mxu0  ;;  %v2475_v49 = vpop.f32.mrb[31].mxu1  ;;  %v2792_v58 = vld [vmem:[%s3222_s11 + $0x30] sm:$0xff]  ;;  %s2084_s11 = scalar_lea.sflag [#allocation4], %s3288_s29 }
 0x3e0   : > { %v3623_v46 = vadd.f32 %v3385_v48, %v1899_v21  ;;  %v1964_v47 = vadd.f32 %v2473_v45, %v3511_v44  ;;  %v1903_v27 = vadd.f32 %v1902_v34, %v3508_v59  ;;  %v2476_v28 = vadd.f32 %v2475_v49, %v2474_v33 }
 0x3e1   : > { %v3628_v53 = vadd.f32 %v3390_v51, %v1901_v61  ;;  %v2015_v24 = vmul.f32 %v3619_v57, %v3619_v57 }
 0x3e2   : > { %v1976_v50 = vadd.f32 %v2792_v58, %v1964_v47  ;;  %v3634_v54 = vadd.f32 %v3392_v52, %v1903_v27  ;;  %v1967_v48 = vadd.f32 %v2476_v28, %v3511_v44  ;;  %v2016_v59 = vmul.f32 %v3623_v46, %v3623_v46 }
 0x3e3   : > { %v2017_v51 = vmul.f32 %v3628_v53, %v3628_v53 }
 0x3e4   : > { %1985 = vst.msk [vmem:[%s3529_s26 + $0x30] sm:$0xff] %vm1978_vm0, %v1976_v50  ;;  %v1977_v2 = vadd.f32 %v2793_v4, %v1967_v48  ;;  %v2037_v56 = vadd.f32 %v2016_v59, %v2015_v24  ;;  %v2018_v60 = vmul.f32 %v3634_v54, %v3634_v54 }
 0x3e6   : > { %1986 = vst.msk [vmem:[%s3529_s26 + $0x38] sm:$0xff] %vm1978_vm0, %v1977_v2  ;;  %2038 = vadd.xlane.f32.xlu0 %v2037_v56  ;;  %v2040_v52 = vadd.f32 %v2018_v60, %v2017_v51 }
 0x3e8   : > { %2041 = vadd.xlane.f32.xlu1 %v2040_v52 }
 0x3e9   : > { %2891 = shalt.err (!%p2888_p9)
}
 0x3ea   : > { %s2892_s19 = scalar_lea.hbm %s3652_s20, 1024  ;;  %s2896_s16 = scalar_lea.hbm %s3808_s17, 2048 }
 0x3eb   : > { %p2893_p2 = scmp.ne.s32.totalorder %s3652_s20, %s2892_s19  ;;  %p2897_p5 = scmp.lt.u32.totalorder %s3652_s20, %s3808_s17 }
 0x3ec   : > { %p2898_p10 = scmp.lt.u32.totalorder %s2896_s16, %s2892_s19  ;;  %p2900_p4 = scmp.lt.u32.totalorder %s2892_s19, %s3652_s20 }
 0x3ed   : > { %p2894_p3 = pnand %p2893_p2, %p3809_p7 }
 0x3ee   : > { %p2899_p12 = por %p2898_p10, %p2897_p5 }
 0x3ef   : > { %p2895_p0 = pneg %p2894_p3 }
 0x3f0   : > { %p2901_p8 = por %p2900_p4, %p2899_p12 }
 0x3f2   : > { %p2902_p11 = pnand %p2901_p8, %p2895_p0 }
 0x3f4   : > { %2905 = shalt.err (!%p2902_p11)
}
 0x3f5   : > { %s2993_s15 = smov 128   ;;  %s2994_s27 = smov 8  }
 0x3f6   : > { %2489 = dma.vmem_to_hbm [thread:$0]  (%p3809_p7), %s3655_s30, 1024, %s3652_s20, %s2084_s11, %s2993_s15, %s2993_s15, %s2994_s27  }
 0x3f7   : > { %s2290_s23 = sshll.u32 %s3288_s29, 7  ;;  %s2436_s20 = sshll.u32 %s3084_s25, 11 }
 0x3f8   : > { %s3684_s10 = scalar_lea.vmem [#allocation9], %s2290_s23  ;;  %s3810_s28 = sld [smem:[#allocation22_spill]] }
 0x3f9   : > { %s2125_s30 = sshll.u32 %s3684_s10, 4  ;;  %s2089_s25 = scalar_lea.sflag [#allocation10], %s3288_s29  ;;  %s3717_s30 = int_to_ptr.vmem [resolvable:$true] %s2125_s30 }
 0x3fa   : > { %s2906_s21 = scalar_lea.vmem %s3717_s30, 2048  ;;  %s2995_s24 = smov [#allocation9]  }
 0x3fb   : > { %p2907_p13 = scmp.ne.s32.totalorder %s3717_s30, %s2906_s21  ;;  %s2910_s16 = sshll.u32 %s2995_s24, 4  ;;  %s2911_s16 = int_to_ptr.vmem [resolvable:$false] %s2910_s16 }
 0x3fc   : > { %s2912_s26 = scalar_lea.vmem %s2911_s16, 4096  ;;  %p2913_p9 = scmp.lt.s32.totalorder %s3717_s30, %s2911_s16 }
 0x3fd   : > { %p2908_p1 = pnand %p2907_p13, %p3809_p7  ;;  %p2914_p2 = scmp.lt.s32.totalorder %s2912_s26, %s2906_s21 }
 0x3fe   : > { %s3715_s19 = scalar_lea.hbm %s3810_s28, %s2436_s20 }
 0x3ff   : > { %p2909_p6 = pneg %p2908_p1  ;;  %p2915_p3 = por %p2914_p2, %p2913_p9 }
 0x401   : > { %p2916_p0 = pnand %p2915_p3, %p2909_p6 }
 0x43e   : > { %v2021_v44 = vpop.xlane.xlu1 %2020 }
 0x43f   : > { %2770 = vrsqrt.f32 %v2021_v44 }
 0x440   : > { %v2024_v62 = vpop.xlane.xlu0 %2023 }
 0x441   : > { %2772 = vrsqrt.f32 %v2024_v62 }
 0x449   : > { %v2771_v63 = vpop.eup %2770 }
 0x44a   : > { %v2051_v0 = vmul.f32 %v2771_v63, %v3516_v55  ;;  %v2052_v16 = vmul.f32 %v2771_v63, %v3520_v7 }
 0x44b   : > { %v2773_v5 = vpop.eup %2772 }
 0x44c   : > { %2067 = vst [vmem:[%s3684_s10] sm:$0xff] %v2051_v0  ;;  %2068 = vst [vmem:[%s3684_s10 + $0x8] sm:$0xff] %v2052_v16  ;;  %v2053_v11 = vmul.f32 %v2773_v5, %v3532_v13  ;;  %v2054_v12 = vmul.f32 %v2773_v5, %v3538_v6 }
 0x44d   : > { %v2027_v55 = vpop.xlane.xlu0 %2026 }
 0x44e   : > { %2069 = vst [vmem:[%s3684_s10 + $0x10] sm:$0xff] %v2053_v11  ;;  %2070 = vst [vmem:[%s3684_s10 + $0x18] sm:$0xff] %v2054_v12  ;;  %2774 = vrsqrt.f32 %v2027_v55 }
 0x44f   : > { %v2030_v7 = vpop.xlane.xlu1 %2029 }
 0x450   : > { %2776 = vrsqrt.f32 %v2030_v7 }
 0x458   : > { %v2775_v1 = vpop.eup %2774 }
 0x459   : > { %v2055_v15 = vmul.f32 %v2775_v1, %v3555_v38  ;;  %v2056_v17 = vmul.f32 %v2775_v1, %v3559_v42 }
 0x45a   : > { %v2777_v8 = vpop.eup %2776 }
 0x45b   : > { %2071 = vst [vmem:[%s3684_s10 + $0x20] sm:$0xff] %v2055_v15  ;;  %2072 = vst [vmem:[%s3684_s10 + $0x28] sm:$0xff] %v2056_v17  ;;  %v2057_v13 = vmul.f32 %v2777_v8, %v3564_v23  ;;  %v2058_v6 = vmul.f32 %v2777_v8, %v3570_v22 }
 0x45d   : > { %2073 = vst [vmem:[%s3684_s10 + $0x30] sm:$0xff] %v2057_v13  ;;  %2074 = vst [vmem:[%s3684_s10 + $0x38] sm:$0xff] %v2058_v6 }
 0x460   : > { %v2033_v9 = vpop.xlane.xlu0 %2032 }
 0x461   : > { %2778 = vrsqrt.f32 %v2033_v9 }
 0x462   : > { %v2036_v19 = vpop.xlane.xlu1 %2035 }
 0x463   : > { %2780 = vrsqrt.f32 %v2036_v19 }
 0x46b   : > { %v2779_v38 = vpop.eup %2778 }
 0x46c   : > { %v2059_v42 = vmul.f32 %v2779_v38, %v3587_v3  ;;  %v2060_v10 = vmul.f32 %v2779_v38, %v3591_v14 }
 0x46d   : > { %v2781_v25 = vpop.eup %2780 }
 0x46e   : > { %2075 = vst [vmem:[%s3684_s10 + $0x40] sm:$0xff] %v2059_v42  ;;  %2076 = vst [vmem:[%s3684_s10 + $0x48] sm:$0xff] %v2060_v10  ;;  %v2061_v23 = vmul.f32 %v2781_v25, %v3596_v18  ;;  %v2062_v22 = vmul.f32 %v2781_v25, %v3602_v20 }
 0x470   : > { %2077 = vst [vmem:[%s3684_s10 + $0x50] sm:$0xff] %v2061_v23  ;;  %2078 = vst [vmem:[%s3684_s10 + $0x58] sm:$0xff] %v2062_v22 }
 0x473   : > { %v2039_v26 = vpop.xlane.xlu0 %2038 }
 0x474   : > { %2782 = vrsqrt.f32 %v2039_v26 }
 0x475   : > { %v2042_v30 = vpop.xlane.xlu1 %2041 }
 0x476   : > { %2784 = vrsqrt.f32 %v2042_v30 }
 0x47e   : > { %v2783_v3 = vpop.eup %2782 }
 0x47f   : > { %v2063_v14 = vmul.f32 %v2783_v3, %v3619_v57  ;;  %v2064_v18 = vmul.f32 %v2783_v3, %v3623_v46 }
 0x480   : > { %v2785_v29 = vpop.eup %2784 }
 0x481   : > { %2079 = vst [vmem:[%s3684_s10 + $0x60] sm:$0xff] %v2063_v14  ;;  %2080 = vst [vmem:[%s3684_s10 + $0x68] sm:$0xff] %v2064_v18  ;;  %v2065_v20 = vmul.f32 %v2785_v29, %v3628_v53  ;;  %v2066_v31 = vmul.f32 %v2785_v29, %v3634_v54 }
 0x483   : > { %2081 = vst [vmem:[%s3684_s10 + $0x70] sm:$0xff] %v2065_v20  ;;  %2082 = vst [vmem:[%s3684_s10 + $0x78] sm:$0xff] %v2066_v31 }
 0x484   : > { %2919 = shalt.err (!%p2916_p0)
}
 0x485   : > { %s2920_s14 = scalar_lea.hbm %s3715_s19, 2048  ;;  %s2924_s23 = scalar_lea.hbm %s3810_s28, 4096 }
 0x486   : > { %p2921_p5 = scmp.ne.s32.totalorder %s3715_s19, %s2920_s14  ;;  %p2925_p4 = scmp.lt.u32.totalorder %s3715_s19, %s3810_s28 }
 0x487   : > { %p2926_p8 = scmp.lt.u32.totalorder %s2924_s23, %s2920_s14  ;;  %p2928_p13 = scmp.lt.u32.totalorder %s2920_s14, %s3715_s19 }
 0x488   : > { %p2922_p10 = pnand %p2921_p5, %p3809_p7 }
 0x489   : > { %p2927_p11 = por %p2926_p8, %p2925_p4 }
 0x48a   : > { %p2923_p12 = pneg %p2922_p10 }
 0x48b   : > { %p2929_p1 = por %p2928_p13, %p2927_p11 }
 0x48d   : > { %p2930_p6 = pnand %p2929_p1, %p2923_p12 }
 0x48f   : > { %2933 = shalt.err (!%p2930_p6)
}
 0x490   : > { %s2996_s11 = smov 256   ;;  %s2997_s18 = smov 16  }
 0x491   : > { %2490 = dma.vmem_to_hbm [thread:$0]  (%p3809_p7), %s3717_s30, 2048, %s3715_s19, %s2089_s25, %s2996_s11, %s2996_s11, %s2997_s18  }
 0x492 PF: > { %s3811_s21 = sld [smem:[#allocation17_spill]]  ;;  %s3812_s24 = sld [smem:[#allocation15_spill]] }
 0x493   : > { %s3813_s16 = sld [smem:[#allocation20_spill]] }
 0x498   : > { %p2516_p9 = scmp.ge.s32.totalorder %s3811_s21, 2  ;;  %s2144_s26 = sand.u32 1, %s3812_s24  }
 0x499   : > { %p3814_p2 = scmp.ne.s32.totalorder %s3813_s16, 0  ;;  %s2145_s14 = scalar_lea.sflag [#allocation4], %s2144_s26 }
 0x49b   : > { %p2504_p3 = pnand %p2516_p9, %p3814_p2 }
 0x49d   : > { %2959 = dma.done.wait (!%p2504_p3), %s2145_s14, 1024  }
 0x49e   : > { %2961 = vsyncadd (!%p2504_p3), %s2145_s14, 4294966272  ;;  %s2154_s15 = scalar_lea.sflag [#allocation10], %s2144_s26 }
 0x49f   : > { %2963 = dma.done.wait (!%p2504_p3), %s2154_s15, 2048  }
 0x4a0   : > { %2965 = vsyncadd (!%p2504_p3), %s2154_s15, 4294965248  ;;  %s3815_s24 = sld [smem:[#allocation18_spill]]  ;;  %s3816_s27 = sld [smem:[#allocation16_spill]] }
 0x4a1   : > { %s3817_s23 = sld [smem:[#allocation19_spill]]  ;;  %s3818_s21 = smov %s2972_s22 }
 0x4a6   : > { %p28_p7 = scmp.ge.s32.totalorder %s3815_s24, 4   ;;  %s3819_s22 = smov %s3816_s27 }
 0x4a8   :  { %30 = sbr.rel (!%p28_p7) target bundleno = 10 (0xa), region = 137 }
 0x4af   :  { %2167 = vsyncpa [#allocation3], 1 }
 0x4b0   :  { %2169 = vsyncpa [#allocation3 + $0x1], 1 }
 0x4b1   :  { %2170 = vsyncpa [#allocation6], 1 }
 0x4b2   :  { %2171 = vsyncpa [#allocation4], 1 }
 0x4b3   :  { %2173 = vsyncpa [#allocation4 + $0x1], 1 }
 0x4b4   :  { %2174 = vsyncpa [#allocation10], 1 }
 0x4b5   :  { %2176 = vsyncpa [#allocation10 + $0x1], 1 }

</bundles_post_ra>
